<compile_context>
chip_gen: v6e
topology: v6e:2x2x1
jax: 0.10.0
libtpu: 0.0.40
codegen_flags: <defaults>
</compile_context>

<pallas_src>
import functools

import jax
import jax.numpy as jnp
from jax.experimental import pallas as pl
from jax.experimental.pallas import tpu as pltpu


def _round_up(x, m):
    return (x + m - 1) // m * m


def _lstm_layer_kernel(x_ref, wih_t_ref, whh_t_ref, b_ref, *refs,
                       hidden_size, t_blk, seq_valid, emit_outputs):
    """One grid step = one block of t_blk timesteps for a single LSTM layer.

    hidden_size here is the lane-padded hidden size (multiple of 128).
    seq_valid is the true sequence length if the last block is padded, else None.
    """
    if emit_outputs:
        out_ref, h_out_ref, c_out_ref, gates_scr, h_scr, c_scr = refs
    else:
        out_ref = None
        h_out_ref, c_out_ref, gates_scr, h_scr, c_scr = refs

    blk = pl.program_id(0)

    @pl.when(blk == 0)
    def _():
        h_scr[...] = jnp.zeros_like(h_scr)
        c_scr[...] = jnp.zeros_like(c_scr)

    H = hidden_size
    T = t_blk
    x_blk = x_ref[...]                       # (T, B, in)  in matmul dtype
    _, B, in_size = x_blk.shape
    w_hh_t = whh_t_ref[...]                  # (H, 4H)     in matmul dtype
    mm_dtype = w_hh_t.dtype

    # Hoisted input projection for the whole time block: one big MXU matmul
    # with M = T*B, bias folded in, f32 accumulation.  Stored to VMEM scratch
    # so only one timestep's gates live in vregs inside the recurrence.
    gates_scr[...] = (
        jnp.dot(x_blk.reshape(T * B, in_size), wih_t_ref[...],
                preferred_element_type=jnp.float32)
        + b_ref[...]
    ).reshape(T, B, 4 * H)

    h = h_scr[...]                           # f32 state
    c = c_scr[...]

    # Statically-unrolled recurrence; only the small (B,H)x(H,4H) matmul plus
    # the gate nonlinearities remain on the sequential critical path.
    for t in range(T):
        g = gates_scr[t] + jnp.dot(h.astype(mm_dtype), w_hh_t,
                                   preferred_element_type=jnp.float32)
        # PyTorch gate order: i, f, g, o.  H is a multiple of 128, so these
        # slices are lane-aligned (no masked selects).
        i_g = jax.nn.sigmoid(g[:, 0 * H:1 * H])
        f_g = jax.nn.sigmoid(g[:, 1 * H:2 * H])
        g_g = jnp.tanh(g[:, 2 * H:3 * H])
        o_g = jax.nn.sigmoid(g[:, 3 * H:4 * H])
        c_new = f_g * c + i_g * g_g
        h_new = o_g * jnp.tanh(c_new)
        if seq_valid is not None:
            # Tail masking: freeze the state on padded timesteps.
            valid = (blk * T + t) < seq_valid
            c = jnp.where(valid, c_new, c)
            h = jnp.where(valid, h_new, h)
        else:
            c = c_new
            h = h_new
        if emit_outputs:
            out_ref[t] = h.astype(out_ref.dtype)

    h_scr[...] = h
    c_scr[...] = c

    @pl.when(blk == pl.num_programs(0) - 1)
    def _():
        h_out_ref[...] = h.astype(h_out_ref.dtype)
        c_out_ref[...] = c.astype(c_out_ref.dtype)


def _pad_lstm_weights(w_ih, w_hh, b_ih, b_hh, H, Hp, in_eff, matmul_dtype):
    """Pad per-gate blocks of the LSTM weights to the lane-padded hidden size
    and pre-transpose to contraction-major layout.  Zero padding keeps the
    real lanes numerically exact."""
    in_raw = w_ih.shape[1]
    w_ih4 = jnp.asarray(w_ih, jnp.float32).reshape(4, H, in_raw)
    w_ih4 = jnp.pad(w_ih4, ((0, 0), (0, Hp - H), (0, in_eff - in_raw)))
    w_hh4 = jnp.asarray(w_hh, jnp.float32).reshape(4, H, H)
    w_hh4 = jnp.pad(w_hh4, ((0, 0), (0, Hp - H), (0, Hp - H)))
    b4 = (jnp.asarray(b_ih, jnp.float32)
          + jnp.asarray(b_hh, jnp.float32)).reshape(4, H)
    b4 = jnp.pad(b4, ((0, 0), (0, Hp - H)))
    w_ih_t = w_ih4.reshape(4 * Hp, in_eff).T.astype(matmul_dtype)   # (in, 4Hp)
    w_hh_t = w_hh4.reshape(4 * Hp, Hp).T.astype(matmul_dtype)       # (Hp, 4Hp)
    b = b4.reshape(1, 4 * Hp)                                        # f32
    return w_ih_t, w_hh_t, b


def lstm_layer(x, w_ih, w_hh, b_ih, b_hh, hidden_size, hidden_pad, *,
               t_blk, seq_valid, matmul_dtype=jnp.bfloat16, emit_outputs=True):
    """One LSTM layer over a (seq-padded, batch-padded) sequence.

    x: (seq_pad, batch_pad, in_eff) in matmul_dtype; seq_pad % t_blk == 0.
    Returns (outputs (seq_pad,batch_pad,Hp) in matmul_dtype, h_n, c_n) if
    emit_outputs else (h_n, c_n); h_n/c_n are (batch_pad, Hp) f32.
    """
    seq_pad, batch, in_eff = x.shape
    H, Hp = hidden_size, hidden_pad
    assert seq_pad % t_blk == 0

    w_ih_t, w_hh_t, b = _pad_lstm_weights(
        w_ih, w_hh, b_ih, b_hh, H, Hp, in_eff, matmul_dtype)

    needs_mask = seq_pad != seq_valid
    kernel = functools.partial(
        _lstm_layer_kernel, hidden_size=Hp, t_blk=t_blk,
        seq_valid=(seq_valid if needs_mask else None),
        emit_outputs=emit_outputs)

    h_shape = jax.ShapeDtypeStruct((batch, Hp), jnp.float32)
    c_shape = jax.ShapeDtypeStruct((batch, Hp), jnp.float32)
    hc_spec = pl.BlockSpec((batch, Hp), lambda i: (0, 0))

    if emit_outputs:
        out_shapes = (jax.ShapeDtypeStruct((seq_pad, batch, Hp), matmul_dtype),
                      h_shape, c_shape)
        out_specs = [pl.BlockSpec((t_blk, batch, Hp), lambda i: (i, 0, 0)),
                     hc_spec, hc_spec]
    else:
        out_shapes = (h_shape, c_shape)
        out_specs = [hc_spec, hc_spec]

    # Explicit VMEM budget (double-buffered blocks + resident weights + scratch).
    mm_bytes = jnp.dtype(matmul_dtype).itemsize
    est = (2 * t_blk * batch * in_eff * mm_bytes                    # x blocks
           + 2 * (in_eff * 4 * Hp + Hp * 4 * Hp) * mm_bytes         # weights
           + 2 * 4 * Hp * 4                                         # bias
           + (2 * t_blk * batch * Hp * mm_bytes if emit_outputs else 0)
           + 2 * 2 * batch * Hp * 4                                 # h/c out blocks
           + t_blk * batch * 4 * Hp * 4                             # gates scratch
           + 2 * batch * Hp * 4)                                    # h/c scratch
    vmem_limit = int(max(32 * 1024 * 1024, est * 5 // 4))

    grid_spec = pltpu.PrefetchScalarGridSpec(
        num_scalar_prefetch=0,
        grid=(seq_pad // t_blk,),
        in_specs=[
            pl.BlockSpec((t_blk, batch, in_eff), lambda i: (i, 0, 0)),  # x block
            pl.BlockSpec((in_eff, 4 * Hp), lambda i: (0, 0)),           # W_ih^T
            pl.BlockSpec((Hp, 4 * Hp), lambda i: (0, 0)),               # W_hh^T
            pl.BlockSpec((1, 4 * Hp), lambda i: (0, 0)),                # bias (f32)
        ],
        out_specs=out_specs,
        scratch_shapes=[
            pltpu.VMEM((t_blk, batch, 4 * Hp), jnp.float32),  # hoisted gates
            pltpu.VMEM((batch, Hp), jnp.float32),             # h state (carried)
            pltpu.VMEM((batch, Hp), jnp.float32),             # c state (carried)
        ],
    )

    return pl.pallas_call(
        kernel,
        out_shape=out_shapes,
        grid_spec=grid_spec,
        compiler_params=pltpu.CompilerParams(
            dimension_semantics=("arbitrary",),   # sequential time axis
            vmem_limit_bytes=vmem_limit,
        ),
    )(x, w_ih_t, w_hh_t, b)


def make_params(key, vocab_input_size, embedding_size, hidden_size, num_layers):
    """Deterministic parameter init (shapes match torch.nn.Embedding / torch.nn.LSTM)."""
    keys = jax.random.split(key, 1 + 4 * num_layers)
    params = {}
    params["embedding"] = jax.random.normal(
        keys[0], (vocab_input_size, embedding_size), jnp.float32) * 0.1
    layers = []
    k = 1.0 / jnp.sqrt(hidden_size)
    for layer in range(num_layers):
        in_size = embedding_size if layer == 0 else hidden_size
        kw = keys[1 + 4 * layer: 1 + 4 * (layer + 1)]
        layers.append({
            "w_ih": jax.random.uniform(kw[0], (4 * hidden_size, in_size),
                                       jnp.float32, -k, k),
            "w_hh": jax.random.uniform(kw[1], (4 * hidden_size, hidden_size),
                                       jnp.float32, -k, k),
            "b_ih": jax.random.uniform(kw[2], (4 * hidden_size,),
                                       jnp.float32, -k, k),
            "b_hh": jax.random.uniform(kw[3], (4 * hidden_size,),
                                       jnp.float32, -k, k),
        })
    params["lstm"] = layers
    return params


def s2s_encoder_forward(params, x_tokens, hidden_size, num_layers, *,
                        t_blk=32, matmul_dtype=jnp.bfloat16):
    """x_tokens: int32 (seq_len, batch). Returns (hidden, cell): (num_layers, batch, H)."""
    seq_len, batch = x_tokens.shape
    H = hidden_size
    Hp = _round_up(H, 128)      # lane-aligned gate slices / lane-dense stores

    # Embedding lookup (XLA gather glue); dropout p=0.0 -> identity.
    # TODO(synk): fuse this gather into the layer-0 kernel via scalar-prefetched
    # token ids + per-block row DMA to avoid one HBM round trip of the embedding.
    emb = jnp.take(params["embedding"], x_tokens, axis=0)  # (seq, batch, emb)

    # Pad batch to a full sublane group (8); padded rows are sliced off below.
    b_pad = (-batch) % 8
    if b_pad:
        emb = jnp.pad(emb, ((0, 0), (0, b_pad), (0, 0)))

    # Pad the sequence up to a multiple of the time block; padded steps are
    # masked inside the kernel (state frozen), so results are exact.
    t_eff = max(1, min(t_blk, seq_len))
    seq_pad = _round_up(seq_len, t_eff)
    if seq_pad != seq_len:
        emb = jnp.pad(emb, ((0, seq_pad - seq_len), (0, 0), (0, 0)))

    layer_in = emb.astype(matmul_dtype)
    h_list, c_list = [], []
    for layer in range(num_layers):
        p = params["lstm"][layer]
        last = layer == num_layers - 1
        res = lstm_layer(
            layer_in, p["w_ih"], p["w_hh"], p["b_ih"], p["b_hh"], H, Hp,
            t_blk=t_eff, seq_valid=seq_len, matmul_dtype=matmul_dtype,
            emit_outputs=not last)
        if last:
            h_n, c_n = res            # final layer: dead outputs not emitted
        else:
            layer_in, h_n, c_n = res  # bf16 activations feed next layer directly
        # PyTorch applies dropout between layers during training; p=0.0 -> identity.
        h_list.append(h_n[:batch, :H])
        c_list.append(c_n[:batch, :H])

    hidden = jnp.stack(h_list, axis=0)  # (num_layers, batch, H)
    cell = jnp.stack(c_list, axis=0)    # (num_layers, batch, H)
    return hidden, cell


def _lstm_reference(params, x_tokens, hidden_size, num_layers):
    """Pure-JAX f32 reference of the PyTorch forward, for correctness checking."""
    H = hidden_size
    emb = jnp.take(params["embedding"], x_tokens, axis=0).astype(jnp.float32)
    B = x_tokens.shape[1]
    layer_in = emb
    hs, cs = [], []
    for layer in range(num_layers):
        p = params["lstm"][layer]
        w_ih, w_hh = p["w_ih"], p["w_hh"]
        b = p["b_ih"] + p["b_hh"]

        def step(carry, x_t, w_ih=w_ih, w_hh=w_hh, b=b):
            h, c = carry
            g = x_t @ w_ih.T + h @ w_hh.T + b
            i_g = jax.nn.sigmoid(g[:, 0 * H:1 * H])
            f_g = jax.nn.sigmoid(g[:, 1 * H:2 * H])
            g_g = jnp.tanh(g[:, 2 * H:3 * H])
            o_g = jax.nn.sigmoid(g[:, 3 * H:4 * H])
            c_new = f_g * c + i_g * g_g
            h_new = o_g * jnp.tanh(c_new)
            return (h_new, c_new), h_new

        init = (jnp.zeros((B, H), jnp.float32), jnp.zeros((B, H), jnp.float32))
        (h_n, c_n), outs = jax.lax.scan(step, init, layer_in)
        layer_in = outs
        hs.append(h_n)
        cs.append(c_n)
    return jnp.stack(hs, axis=0), jnp.stack(cs, axis=0)


if __name__ == "__main__":
    vocab_input_size = 20
    embedding_size = 16
    hidden_size = 32
    num_layers = 2
    seq_len = 8
    batch = 2

    key = jax.random.PRNGKey(0)
    k_params, k_tokens, k_tokens2 = jax.random.split(key, 3)

    params = make_params(k_params, vocab_input_size, embedding_size,
                         hidden_size, num_layers)
    x_tokens = jax.random.randint(k_tokens, (seq_len, batch), 0,
                                  vocab_input_size, dtype=jnp.int32)

    # Default path: bf16 MXU operands, f32 accumulation/state.
    hidden, cell = s2s_encoder_forward(params, x_tokens, hidden_size, num_layers)
    hidden, cell = jax.block_until_ready((hidden, cell))
    assert hidden.shape == (num_layers, batch, hidden_size)
    assert cell.shape == (num_layers, batch, hidden_size)

    ref_h, ref_c = _lstm_reference(params, x_tokens, hidden_size, num_layers)
    assert jnp.allclose(hidden, ref_h, atol=3e-2, rtol=3e-2)
    assert jnp.allclose(cell, ref_c, atol=3e-2, rtol=3e-2)

    # Exact check with f32 MXU operands (same kernel structure).
    h32, c32 = s2s_encoder_forward(params, x_tokens, hidden_size, num_layers,
                                   matmul_dtype=jnp.float32)
    h32, c32 = jax.block_until_ready((h32, c32))
    assert jnp.allclose(h32, ref_h, atol=1e-4, rtol=1e-4)
    assert jnp.allclose(c32, ref_c, atol=1e-4, rtol=1e-4)

    # Tail-masking / multi-block / batch-padding check: seq_len not divisible
    # by the time block and batch not a multiple of 8.
    seq2, batch2 = 11, 3
    x_tokens2 = jax.random.randint(k_tokens2, (seq2, batch2), 0,
                                   vocab_input_size, dtype=jnp.int32)
    h2, c2 = s2s_encoder_forward(params, x_tokens2, hidden_size, num_layers,
                                 t_blk=4, matmul_dtype=jnp.float32)
    h2, c2 = jax.block_until_ready((h2, c2))
    ref_h2, ref_c2 = _lstm_reference(params, x_tokens2, hidden_size, num_layers)
    assert jnp.allclose(h2, ref_h2, atol=1e-4, rtol=1e-4)
    assert jnp.allclose(c2, ref_c2, atol=1e-4, rtol=1e-4)

    print("KERNEL_OK")
</pallas_src>

<mosaic_0001>
module attributes {stable_mosaic.version = 11 : i64} {
  func.func @_lstm_layer_kernel(%arg0: i32, %arg1: memref<8x8x16xbf16, #tpu.memory_space<vmem>>, %arg2: memref<16x512xbf16, #tpu.memory_space<vmem>>, %arg3: memref<128x512xbf16, #tpu.memory_space<vmem>>, %arg4: memref<1x512xf32, #tpu.memory_space<vmem>>, %arg5: memref<8x8x128xbf16, #tpu.memory_space<vmem>>, %arg6: memref<8x128xf32, #tpu.memory_space<vmem>>, %arg7: memref<8x128xf32, #tpu.memory_space<vmem>>, %arg8: memref<8x8x512xf32, #tpu.memory_space<vmem>>, %arg9: memref<8x128xf32, #tpu.memory_space<vmem>>, %arg10: memref<8x128xf32, #tpu.memory_space<vmem>>) attributes {dimension_semantics = [#tpu.dimension_semantics<arbitrary>], iteration_bounds = array<i64: 1>, scalar_prefetch = 0 : i64, scratch_operands = 3 : i64, tpu.core_type = #tpu.core_type<tc>, window_params = [{transform_indices = @transform_0, window_bounds = array<i64: 8, 8, 16>}, {pipeline_mode = #tpu.pipeline_mode<synchronous>, transform_indices = @transform_1, window_bounds = array<i64: 16, 512>}, {pipeline_mode = #tpu.pipeline_mode<synchronous>, transform_indices = @transform_2, window_bounds = array<i64: 128, 512>}, {pipeline_mode = #tpu.pipeline_mode<synchronous>, transform_indices = @transform_3, window_bounds = array<i64: 1, 512>}, {transform_indices = @transform_4, window_bounds = array<i64: 8, 8, 128>}, {pipeline_mode = #tpu.pipeline_mode<synchronous>, transform_indices = @transform_5, window_bounds = array<i64: 8, 128>}, {pipeline_mode = #tpu.pipeline_mode<synchronous>, transform_indices = @transform_6, window_bounds = array<i64: 8, 128>}]} {
    %c0_i32 = arith.constant 0 : i32
    %0 = arith.cmpi eq, %arg0, %c0_i32 : i32
    %1 = arith.extui %0 : i1 to i32
    %c0_i32_0 = arith.constant 0 : i32
    %2 = arith.cmpi ne, %1, %c0_i32_0 : i32
    scf.if %2 {
      %cst_95 = arith.constant 0.000000e+00 : f32
      %292 = vector.broadcast %cst_95 : f32 to vector<8x128xf32>
      %c0_96 = arith.constant 0 : index
      %c0_97 = arith.constant 0 : index
      %293 = vector.load %arg9[%c0_96, %c0_97] : memref<8x128xf32, #tpu.memory_space<vmem>>, vector<8x128xf32>
      tpu.vector_store %arg9[%c0_96, %c0_97], %292 {strides = array<i32>} : memref<8x128xf32, #tpu.memory_space<vmem>>, vector<8x128xf32>,
      %cst_98 = arith.constant 0.000000e+00 : f32
      %294 = vector.broadcast %cst_98 : f32 to vector<8x128xf32>
      %c0_99 = arith.constant 0 : index
      %c0_100 = arith.constant 0 : index
      %295 = vector.load %arg10[%c0_99, %c0_100] : memref<8x128xf32, #tpu.memory_space<vmem>>, vector<8x128xf32>
      tpu.vector_store %arg10[%c0_99, %c0_100], %294 {strides = array<i32>} : memref<8x128xf32, #tpu.memory_space<vmem>>, vector<8x128xf32>,
    } else {
    }
    %c0 = arith.constant 0 : index
    %c0_1 = arith.constant 0 : index
    %c0_2 = arith.constant 0 : index
    %3 = vector.load %arg1[%c0, %c0_1, %c0_2] : memref<8x8x16xbf16, #tpu.memory_space<vmem>>, vector<8x8x16xbf16>
    %c0_3 = arith.constant 0 : index
    %c0_4 = arith.constant 0 : index
    %4 = vector.load %arg3[%c0_3, %c0_4] : memref<128x512xbf16, #tpu.memory_space<vmem>>, vector<128x512xbf16>
    %5 = vector.shape_cast %3 : vector<8x8x16xbf16> to vector<64x16xbf16>
    %c0_5 = arith.constant 0 : index
    %c0_6 = arith.constant 0 : index
    %6 = vector.load %arg2[%c0_5, %c0_6] : memref<16x512xbf16, #tpu.memory_space<vmem>>, vector<16x512xbf16>
    %cst = arith.constant dense<0.000000e+00> : vector<64x512xf32>
    %7 = tpu.matmul %5, %6, %cst {dimension_numbers = #tpu.dot_dimension_numbers<[1], [0], [0], [1], [0, 0, 1, 1], [], []>} : vector<64x16xbf16>, vector<16x512xbf16>, vector<64x512xf32> -> vector<64x512xf32>
    %c0_7 = arith.constant 0 : index
    %c0_8 = arith.constant 0 : index
    %8 = vector.load %arg4[%c0_7, %c0_8] : memref<1x512xf32, #tpu.memory_space<vmem>>, vector<1x512xf32>
    %9 = vector.broadcast %8 : vector<1x512xf32> to vector<64x512xf32>
    %10 = arith.addf %7, %9 : vector<64x512xf32>
    %11 = vector.shape_cast %10 : vector<64x512xf32> to vector<8x8x512xf32>
    %c0_9 = arith.constant 0 : index
    %c0_10 = arith.constant 0 : index
    %c0_11 = arith.constant 0 : index
    %12 = vector.load %arg8[%c0_9, %c0_10, %c0_11] : memref<8x8x512xf32, #tpu.memory_space<vmem>>, vector<8x8x512xf32>
    tpu.vector_store %arg8[%c0_9, %c0_10, %c0_11], %11 {strides = array<i32>} : memref<8x8x512xf32, #tpu.memory_space<vmem>>, vector<8x8x512xf32>,
    %c0_12 = arith.constant 0 : index
    %c0_13 = arith.constant 0 : index
    %13 = vector.load %arg9[%c0_12, %c0_13] : memref<8x128xf32, #tpu.memory_space<vmem>>, vector<8x128xf32>
    %c0_14 = arith.constant 0 : index
    %c0_15 = arith.constant 0 : index
    %14 = vector.load %arg10[%c0_14, %c0_15] : memref<8x128xf32, #tpu.memory_space<vmem>>, vector<8x128xf32>
    %c0_16 = arith.constant 0 : index
    %c0_17 = arith.constant 0 : index
    %c0_18 = arith.constant 0 : index
    %15 = vector.load %arg8[%c0_16, %c0_17, %c0_18] : memref<8x8x512xf32, #tpu.memory_space<vmem>>, vector<1x8x512xf32>
    %16 = vector.shape_cast %15 : vector<1x8x512xf32> to vector<8x512xf32>
    %17 = arith.truncf %13 : vector<8x128xf32> to vector<8x128xbf16>
    %cst_19 = arith.constant dense<0.000000e+00> : vector<8x512xf32>
    %18 = tpu.matmul %17, %4, %cst_19 {dimension_numbers = #tpu.dot_dimension_numbers<[1], [0], [0], [1], [0, 0, 1, 1], [], []>} : vector<8x128xbf16>, vector<128x512xbf16>, vector<8x512xf32> -> vector<8x512xf32>
    %19 = arith.addf %16, %18 : vector<8x512xf32>
    %20 = vector.extract_strided_slice %19 {offsets = [0, 0], sizes = [8, 128], strides = [1, 1]} : vector<8x512xf32> to vector<8x128xf32>
    %21 = arith.negf %20 : vector<8x128xf32>
    %22 = math.exp %21 : vector<8x128xf32>
    %cst_20 = arith.constant 1.000000e+00 : f32
    %23 = vector.broadcast %cst_20 : f32 to vector<8x128xf32>
    %24 = arith.addf %23, %22 : vector<8x128xf32>
    %25 = arith.divf %23, %24 : vector<8x128xf32>
    %26 = vector.extract_strided_slice %19 {offsets = [0, 128], sizes = [8, 128], strides = [1, 1]} : vector<8x512xf32> to vector<8x128xf32>
    %27 = arith.negf %26 : vector<8x128xf32>
    %28 = math.exp %27 : vector<8x128xf32>
    %cst_21 = arith.constant 1.000000e+00 : f32
    %29 = vector.broadcast %cst_21 : f32 to vector<8x128xf32>
    %30 = arith.addf %29, %28 : vector<8x128xf32>
    %31 = arith.divf %29, %30 : vector<8x128xf32>
    %32 = vector.extract_strided_slice %19 {offsets = [0, 256], sizes = [8, 128], strides = [1, 1]} : vector<8x512xf32> to vector<8x128xf32>
    %33 = math.tanh %32 : vector<8x128xf32>
    %34 = vector.extract_strided_slice %19 {offsets = [0, 384], sizes = [8, 128], strides = [1, 1]} : vector<8x512xf32> to vector<8x128xf32>
    %35 = arith.negf %34 : vector<8x128xf32>
    %36 = math.exp %35 : vector<8x128xf32>
    %cst_22 = arith.constant 1.000000e+00 : f32
    %37 = vector.broadcast %cst_22 : f32 to vector<8x128xf32>
    %38 = arith.addf %37, %36 : vector<8x128xf32>
    %39 = arith.divf %37, %38 : vector<8x128xf32>
    %40 = arith.mulf %31, %14 : vector<8x128xf32>
    %41 = arith.mulf %25, %33 : vector<8x128xf32>
    %42 = arith.addf %40, %41 : vector<8x128xf32>
    %43 = math.tanh %42 : vector<8x128xf32>
    %44 = arith.mulf %39, %43 : vector<8x128xf32>
    %45 = arith.truncf %44 : vector<8x128xf32> to vector<8x128xbf16>
    %c0_23 = arith.constant 0 : index
    %c0_24 = arith.constant 0 : index
    %c0_25 = arith.constant 0 : index
    %46 = vector.load %arg5[%c0_23, %c0_24, %c0_25] : memref<8x8x128xbf16, #tpu.memory_space<vmem>>, vector<1x8x128xbf16>
    %47 = vector.shape_cast %46 : vector<1x8x128xbf16> to vector<8x128xbf16>
    %48 = vector.shape_cast %45 : vector<8x128xbf16> to vector<1x8x128xbf16>
    tpu.vector_store %arg5[%c0_23, %c0_24, %c0_25], %48 {strides = array<i32>} : memref<8x8x128xbf16, #tpu.memory_space<vmem>>, vector<1x8x128xbf16>,
    %c1 = arith.constant 1 : index
    %c0_26 = arith.constant 0 : index
    %c0_27 = arith.constant 0 : index
    %49 = vector.load %arg8[%c1, %c0_26, %c0_27] : memref<8x8x512xf32, #tpu.memory_space<vmem>>, vector<1x8x512xf32>
    %50 = vector.shape_cast %49 : vector<1x8x512xf32> to vector<8x512xf32>
    %51 = arith.truncf %44 : vector<8x128xf32> to vector<8x128xbf16>
    %cst_28 = arith.constant dense<0.000000e+00> : vector<8x512xf32>
    %52 = tpu.matmul %51, %4, %cst_28 {dimension_numbers = #tpu.dot_dimension_numbers<[1], [0], [0], [1], [0, 0, 1, 1], [], []>} : vector<8x128xbf16>, vector<128x512xbf16>, vector<8x512xf32> -> vector<8x512xf32>
    %53 = arith.addf %50, %52 : vector<8x512xf32>
    %54 = vector.extract_strided_slice %53 {offsets = [0, 0], sizes = [8, 128], strides = [1, 1]} : vector<8x512xf32> to vector<8x128xf32>
    %55 = arith.negf %54 : vector<8x128xf32>
    %56 = math.exp %55 : vector<8x128xf32>
    %cst_29 = arith.constant 1.000000e+00 : f32
    %57 = vector.broadcast %cst_29 : f32 to vector<8x128xf32>
    %58 = arith.addf %57, %56 : vector<8x128xf32>
    %59 = arith.divf %57, %58 : vector<8x128xf32>
    %60 = vector.extract_strided_slice %53 {offsets = [0, 128], sizes = [8, 128], strides = [1, 1]} : vector<8x512xf32> to vector<8x128xf32>
    %61 = arith.negf %60 : vector<8x128xf32>
    %62 = math.exp %61 : vector<8x128xf32>
    %cst_30 = arith.constant 1.000000e+00 : f32
    %63 = vector.broadcast %cst_30 : f32 to vector<8x128xf32>
    %64 = arith.addf %63, %62 : vector<8x128xf32>
    %65 = arith.divf %63, %64 : vector<8x128xf32>
    %66 = vector.extract_strided_slice %53 {offsets = [0, 256], sizes = [8, 128], strides = [1, 1]} : vector<8x512xf32> to vector<8x128xf32>
    %67 = math.tanh %66 : vector<8x128xf32>
    %68 = vector.extract_strided_slice %53 {offsets = [0, 384], sizes = [8, 128], strides = [1, 1]} : vector<8x512xf32> to vector<8x128xf32>
    %69 = arith.negf %68 : vector<8x128xf32>
    %70 = math.exp %69 : vector<8x128xf32>
    %cst_31 = arith.constant 1.000000e+00 : f32
    %71 = vector.broadcast %cst_31 : f32 to vector<8x128xf32>
    %72 = arith.addf %71, %70 : vector<8x128xf32>
    %73 = arith.divf %71, %72 : vector<8x128xf32>
    %74 = arith.mulf %65, %42 : vector<8x128xf32>
    %75 = arith.mulf %59, %67 : vector<8x128xf32>
    %76 = arith.addf %74, %75 : vector<8x128xf32>
    %77 = math.tanh %76 : vector<8x128xf32>
    %78 = arith.mulf %73, %77 : vector<8x128xf32>
    %79 = arith.truncf %78 : vector<8x128xf32> to vector<8x128xbf16>
    %c1_32 = arith.constant 1 : index
    %c0_33 = arith.constant 0 : index
    %c0_34 = arith.constant 0 : index
    %80 = vector.load %arg5[%c1_32, %c0_33, %c0_34] : memref<8x8x128xbf16, #tpu.memory_space<vmem>>, vector<1x8x128xbf16>
    %81 = vector.shape_cast %80 : vector<1x8x128xbf16> to vector<8x128xbf16>
    %82 = vector.shape_cast %79 : vector<8x128xbf16> to vector<1x8x128xbf16>
    tpu.vector_store %arg5[%c1_32, %c0_33, %c0_34], %82 {strides = array<i32>} : memref<8x8x128xbf16, #tpu.memory_space<vmem>>, vector<1x8x128xbf16>,
    %c2 = arith.constant 2 : index
    %c0_35 = arith.constant 0 : index
    %c0_36 = arith.constant 0 : index
    %83 = vector.load %arg8[%c2, %c0_35, %c0_36] : memref<8x8x512xf32, #tpu.memory_space<vmem>>, vector<1x8x512xf32>
    %84 = vector.shape_cast %83 : vector<1x8x512xf32> to vector<8x512xf32>
    %85 = arith.truncf %78 : vector<8x128xf32> to vector<8x128xbf16>
    %cst_37 = arith.constant dense<0.000000e+00> : vector<8x512xf32>
    %86 = tpu.matmul %85, %4, %cst_37 {dimension_numbers = #tpu.dot_dimension_numbers<[1], [0], [0], [1], [0, 0, 1, 1], [], []>} : vector<8x128xbf16>, vector<128x512xbf16>, vector<8x512xf32> -> vector<8x512xf32>
    %87 = arith.addf %84, %86 : vector<8x512xf32>
    %88 = vector.extract_strided_slice %87 {offsets = [0, 0], sizes = [8, 128], strides = [1, 1]} : vector<8x512xf32> to vector<8x128xf32>
    %89 = arith.negf %88 : vector<8x128xf32>
    %90 = math.exp %89 : vector<8x128xf32>
    %cst_38 = arith.constant 1.000000e+00 : f32
    %91 = vector.broadcast %cst_38 : f32 to vector<8x128xf32>
    %92 = arith.addf %91, %90 : vector<8x128xf32>
    %93 = arith.divf %91, %92 : vector<8x128xf32>
    %94 = vector.extract_strided_slice %87 {offsets = [0, 128], sizes = [8, 128], strides = [1, 1]} : vector<8x512xf32> to vector<8x128xf32>
    %95 = arith.negf %94 : vector<8x128xf32>
    %96 = math.exp %95 : vector<8x128xf32>
    %cst_39 = arith.constant 1.000000e+00 : f32
    %97 = vector.broadcast %cst_39 : f32 to vector<8x128xf32>
    %98 = arith.addf %97, %96 : vector<8x128xf32>
    %99 = arith.divf %97, %98 : vector<8x128xf32>
    %100 = vector.extract_strided_slice %87 {offsets = [0, 256], sizes = [8, 128], strides = [1, 1]} : vector<8x512xf32> to vector<8x128xf32>
    %101 = math.tanh %100 : vector<8x128xf32>
    %102 = vector.extract_strided_slice %87 {offsets = [0, 384], sizes = [8, 128], strides = [1, 1]} : vector<8x512xf32> to vector<8x128xf32>
    %103 = arith.negf %102 : vector<8x128xf32>
    %104 = math.exp %103 : vector<8x128xf32>
    %cst_40 = arith.constant 1.000000e+00 : f32
    %105 = vector.broadcast %cst_40 : f32 to vector<8x128xf32>
    %106 = arith.addf %105, %104 : vector<8x128xf32>
    %107 = arith.divf %105, %106 : vector<8x128xf32>
    %108 = arith.mulf %99, %76 : vector<8x128xf32>
    %109 = arith.mulf %93, %101 : vector<8x128xf32>
    %110 = arith.addf %108, %109 : vector<8x128xf32>
    %111 = math.tanh %110 : vector<8x128xf32>
    %112 = arith.mulf %107, %111 : vector<8x128xf32>
    %113 = arith.truncf %112 : vector<8x128xf32> to vector<8x128xbf16>
    %c2_41 = arith.constant 2 : index
    %c0_42 = arith.constant 0 : index
    %c0_43 = arith.constant 0 : index
    %114 = vector.load %arg5[%c2_41, %c0_42, %c0_43] : memref<8x8x128xbf16, #tpu.memory_space<vmem>>, vector<1x8x128xbf16>
    %115 = vector.shape_cast %114 : vector<1x8x128xbf16> to vector<8x128xbf16>
    %116 = vector.shape_cast %113 : vector<8x128xbf16> to vector<1x8x128xbf16>
    tpu.vector_store %arg5[%c2_41, %c0_42, %c0_43], %116 {strides = array<i32>} : memref<8x8x128xbf16, #tpu.memory_space<vmem>>, vector<1x8x128xbf16>,
    %c3 = arith.constant 3 : index
    %c0_44 = arith.constant 0 : index
    %c0_45 = arith.constant 0 : index
    %117 = vector.load %arg8[%c3, %c0_44, %c0_45] : memref<8x8x512xf32, #tpu.memory_space<vmem>>, vector<1x8x512xf32>
    %118 = vector.shape_cast %117 : vector<1x8x512xf32> to vector<8x512xf32>
    %119 = arith.truncf %112 : vector<8x128xf32> to vector<8x128xbf16>
    %cst_46 = arith.constant dense<0.000000e+00> : vector<8x512xf32>
    %120 = tpu.matmul %119, %4, %cst_46 {dimension_numbers = #tpu.dot_dimension_numbers<[1], [0], [0], [1], [0, 0, 1, 1], [], []>} : vector<8x128xbf16>, vector<128x512xbf16>, vector<8x512xf32> -> vector<8x512xf32>
    %121 = arith.addf %118, %120 : vector<8x512xf32>
    %122 = vector.extract_strided_slice %121 {offsets = [0, 0], sizes = [8, 128], strides = [1, 1]} : vector<8x512xf32> to vector<8x128xf32>
    %123 = arith.negf %122 : vector<8x128xf32>
    %124 = math.exp %123 : vector<8x128xf32>
    %cst_47 = arith.constant 1.000000e+00 : f32
    %125 = vector.broadcast %cst_47 : f32 to vector<8x128xf32>
    %126 = arith.addf %125, %124 : vector<8x128xf32>
    %127 = arith.divf %125, %126 : vector<8x128xf32>
    %128 = vector.extract_strided_slice %121 {offsets = [0, 128], sizes = [8, 128], strides = [1, 1]} : vector<8x512xf32> to vector<8x128xf32>
    %129 = arith.negf %128 : vector<8x128xf32>
    %130 = math.exp %129 : vector<8x128xf32>
    %cst_48 = arith.constant 1.000000e+00 : f32
    %131 = vector.broadcast %cst_48 : f32 to vector<8x128xf32>
    %132 = arith.addf %131, %130 : vector<8x128xf32>
    %133 = arith.divf %131, %132 : vector<8x128xf32>
    %134 = vector.extract_strided_slice %121 {offsets = [0, 256], sizes = [8, 128], strides = [1, 1]} : vector<8x512xf32> to vector<8x128xf32>
    %135 = math.tanh %134 : vector<8x128xf32>
    %136 = vector.extract_strided_slice %121 {offsets = [0, 384], sizes = [8, 128], strides = [1, 1]} : vector<8x512xf32> to vector<8x128xf32>
    %137 = arith.negf %136 : vector<8x128xf32>
    %138 = math.exp %137 : vector<8x128xf32>
    %cst_49 = arith.constant 1.000000e+00 : f32
    %139 = vector.broadcast %cst_49 : f32 to vector<8x128xf32>
    %140 = arith.addf %139, %138 : vector<8x128xf32>
    %141 = arith.divf %139, %140 : vector<8x128xf32>
    %142 = arith.mulf %133, %110 : vector<8x128xf32>
    %143 = arith.mulf %127, %135 : vector<8x128xf32>
    %144 = arith.addf %142, %143 : vector<8x128xf32>
    %145 = math.tanh %144 : vector<8x128xf32>
    %146 = arith.mulf %141, %145 : vector<8x128xf32>
    %147 = arith.truncf %146 : vector<8x128xf32> to vector<8x128xbf16>
    %c3_50 = arith.constant 3 : index
    %c0_51 = arith.constant 0 : index
    %c0_52 = arith.constant 0 : index
    %148 = vector.load %arg5[%c3_50, %c0_51, %c0_52] : memref<8x8x128xbf16, #tpu.memory_space<vmem>>, vector<1x8x128xbf16>
    %149 = vector.shape_cast %148 : vector<1x8x128xbf16> to vector<8x128xbf16>
    %150 = vector.shape_cast %147 : vector<8x128xbf16> to vector<1x8x128xbf16>
    tpu.vector_store %arg5[%c3_50, %c0_51, %c0_52], %150 {strides = array<i32>} : memref<8x8x128xbf16, #tpu.memory_space<vmem>>, vector<1x8x128xbf16>,
    %c4 = arith.constant 4 : index
    %c0_53 = arith.constant 0 : index
    %c0_54 = arith.constant 0 : index
    %151 = vector.load %arg8[%c4, %c0_53, %c0_54] : memref<8x8x512xf32, #tpu.memory_space<vmem>>, vector<1x8x512xf32>
    %152 = vector.shape_cast %151 : vector<1x8x512xf32> to vector<8x512xf32>
    %153 = arith.truncf %146 : vector<8x128xf32> to vector<8x128xbf16>
    %cst_55 = arith.constant dense<0.000000e+00> : vector<8x512xf32>
    %154 = tpu.matmul %153, %4, %cst_55 {dimension_numbers = #tpu.dot_dimension_numbers<[1], [0], [0], [1], [0, 0, 1, 1], [], []>} : vector<8x128xbf16>, vector<128x512xbf16>, vector<8x512xf32> -> vector<8x512xf32>
    %155 = arith.addf %152, %154 : vector<8x512xf32>
    %156 = vector.extract_strided_slice %155 {offsets = [0, 0], sizes = [8, 128], strides = [1, 1]} : vector<8x512xf32> to vector<8x128xf32>
    %157 = arith.negf %156 : vector<8x128xf32>
    %158 = math.exp %157 : vector<8x128xf32>
    %cst_56 = arith.constant 1.000000e+00 : f32
    %159 = vector.broadcast %cst_56 : f32 to vector<8x128xf32>
    %160 = arith.addf %159, %158 : vector<8x128xf32>
    %161 = arith.divf %159, %160 : vector<8x128xf32>
    %162 = vector.extract_strided_slice %155 {offsets = [0, 128], sizes = [8, 128], strides = [1, 1]} : vector<8x512xf32> to vector<8x128xf32>
    %163 = arith.negf %162 : vector<8x128xf32>
    %164 = math.exp %163 : vector<8x128xf32>
    %cst_57 = arith.constant 1.000000e+00 : f32
    %165 = vector.broadcast %cst_57 : f32 to vector<8x128xf32>
    %166 = arith.addf %165, %164 : vector<8x128xf32>
    %167 = arith.divf %165, %166 : vector<8x128xf32>
    %168 = vector.extract_strided_slice %155 {offsets = [0, 256], sizes = [8, 128], strides = [1, 1]} : vector<8x512xf32> to vector<8x128xf32>
    %169 = math.tanh %168 : vector<8x128xf32>
    %170 = vector.extract_strided_slice %155 {offsets = [0, 384], sizes = [8, 128], strides = [1, 1]} : vector<8x512xf32> to vector<8x128xf32>
    %171 = arith.negf %170 : vector<8x128xf32>
    %172 = math.exp %171 : vector<8x128xf32>
    %cst_58 = arith.constant 1.000000e+00 : f32
    %173 = vector.broadcast %cst_58 : f32 to vector<8x128xf32>
    %174 = arith.addf %173, %172 : vector<8x128xf32>
    %175 = arith.divf %173, %174 : vector<8x128xf32>
    %176 = arith.mulf %167, %144 : vector<8x128xf32>
    %177 = arith.mulf %161, %169 : vector<8x128xf32>
    %178 = arith.addf %176, %177 : vector<8x128xf32>
    %179 = math.tanh %178 : vector<8x128xf32>
    %180 = arith.mulf %175, %179 : vector<8x128xf32>
    %181 = arith.truncf %180 : vector<8x128xf32> to vector<8x128xbf16>
    %c4_59 = arith.constant 4 : index
    %c0_60 = arith.constant 0 : index
    %c0_61 = arith.constant 0 : index
    %182 = vector.load %arg5[%c4_59, %c0_60, %c0_61] : memref<8x8x128xbf16, #tpu.memory_space<vmem>>, vector<1x8x128xbf16>
    %183 = vector.shape_cast %182 : vector<1x8x128xbf16> to vector<8x128xbf16>
    %184 = vector.shape_cast %181 : vector<8x128xbf16> to vector<1x8x128xbf16>
    tpu.vector_store %arg5[%c4_59, %c0_60, %c0_61], %184 {strides = array<i32>} : memref<8x8x128xbf16, #tpu.memory_space<vmem>>, vector<1x8x128xbf16>,
    %c5 = arith.constant 5 : index
    %c0_62 = arith.constant 0 : index
    %c0_63 = arith.constant 0 : index
    %185 = vector.load %arg8[%c5, %c0_62, %c0_63] : memref<8x8x512xf32, #tpu.memory_space<vmem>>, vector<1x8x512xf32>
    %186 = vector.shape_cast %185 : vector<1x8x512xf32> to vector<8x512xf32>
    %187 = arith.truncf %180 : vector<8x128xf32> to vector<8x128xbf16>
    %cst_64 = arith.constant dense<0.000000e+00> : vector<8x512xf32>
    %188 = tpu.matmul %187, %4, %cst_64 {dimension_numbers = #tpu.dot_dimension_numbers<[1], [0], [0], [1], [0, 0, 1, 1], [], []>} : vector<8x128xbf16>, vector<128x512xbf16>, vector<8x512xf32> -> vector<8x512xf32>
    %189 = arith.addf %186, %188 : vector<8x512xf32>
    %190 = vector.extract_strided_slice %189 {offsets = [0, 0], sizes = [8, 128], strides = [1, 1]} : vector<8x512xf32> to vector<8x128xf32>
    %191 = arith.negf %190 : vector<8x128xf32>
    %192 = math.exp %191 : vector<8x128xf32>
    %cst_65 = arith.constant 1.000000e+00 : f32
    %193 = vector.broadcast %cst_65 : f32 to vector<8x128xf32>
    %194 = arith.addf %193, %192 : vector<8x128xf32>
    %195 = arith.divf %193, %194 : vector<8x128xf32>
    %196 = vector.extract_strided_slice %189 {offsets = [0, 128], sizes = [8, 128], strides = [1, 1]} : vector<8x512xf32> to vector<8x128xf32>
    %197 = arith.negf %196 : vector<8x128xf32>
    %198 = math.exp %197 : vector<8x128xf32>
    %cst_66 = arith.constant 1.000000e+00 : f32
    %199 = vector.broadcast %cst_66 : f32 to vector<8x128xf32>
    %200 = arith.addf %199, %198 : vector<8x128xf32>
    %201 = arith.divf %199, %200 : vector<8x128xf32>
    %202 = vector.extract_strided_slice %189 {offsets = [0, 256], sizes = [8, 128], strides = [1, 1]} : vector<8x512xf32> to vector<8x128xf32>
    %203 = math.tanh %202 : vector<8x128xf32>
    %204 = vector.extract_strided_slice %189 {offsets = [0, 384], sizes = [8, 128], strides = [1, 1]} : vector<8x512xf32> to vector<8x128xf32>
    %205 = arith.negf %204 : vector<8x128xf32>
    %206 = math.exp %205 : vector<8x128xf32>
    %cst_67 = arith.constant 1.000000e+00 : f32
    %207 = vector.broadcast %cst_67 : f32 to vector<8x128xf32>
    %208 = arith.addf %207, %206 : vector<8x128xf32>
    %209 = arith.divf %207, %208 : vector<8x128xf32>
    %210 = arith.mulf %201, %178 : vector<8x128xf32>
    %211 = arith.mulf %195, %203 : vector<8x128xf32>
    %212 = arith.addf %210, %211 : vector<8x128xf32>
    %213 = math.tanh %212 : vector<8x128xf32>
    %214 = arith.mulf %209, %213 : vector<8x128xf32>
    %215 = arith.truncf %214 : vector<8x128xf32> to vector<8x128xbf16>
    %c5_68 = arith.constant 5 : index
    %c0_69 = arith.constant 0 : index
    %c0_70 = arith.constant 0 : index
    %216 = vector.load %arg5[%c5_68, %c0_69, %c0_70] : memref<8x8x128xbf16, #tpu.memory_space<vmem>>, vector<1x8x128xbf16>
    %217 = vector.shape_cast %216 : vector<1x8x128xbf16> to vector<8x128xbf16>
    %218 = vector.shape_cast %215 : vector<8x128xbf16> to vector<1x8x128xbf16>
    tpu.vector_store %arg5[%c5_68, %c0_69, %c0_70], %218 {strides = array<i32>} : memref<8x8x128xbf16, #tpu.memory_space<vmem>>, vector<1x8x128xbf16>,
    %c6 = arith.constant 6 : index
    %c0_71 = arith.constant 0 : index
    %c0_72 = arith.constant 0 : index
    %219 = vector.load %arg8[%c6, %c0_71, %c0_72] : memref<8x8x512xf32, #tpu.memory_space<vmem>>, vector<1x8x512xf32>
    %220 = vector.shape_cast %219 : vector<1x8x512xf32> to vector<8x512xf32>
    %221 = arith.truncf %214 : vector<8x128xf32> to vector<8x128xbf16>
    %cst_73 = arith.constant dense<0.000000e+00> : vector<8x512xf32>
    %222 = tpu.matmul %221, %4, %cst_73 {dimension_numbers = #tpu.dot_dimension_numbers<[1], [0], [0], [1], [0, 0, 1, 1], [], []>} : vector<8x128xbf16>, vector<128x512xbf16>, vector<8x512xf32> -> vector<8x512xf32>
    %223 = arith.addf %220, %222 : vector<8x512xf32>
    %224 = vector.extract_strided_slice %223 {offsets = [0, 0], sizes = [8, 128], strides = [1, 1]} : vector<8x512xf32> to vector<8x128xf32>
    %225 = arith.negf %224 : vector<8x128xf32>
    %226 = math.exp %225 : vector<8x128xf32>
    %cst_74 = arith.constant 1.000000e+00 : f32
    %227 = vector.broadcast %cst_74 : f32 to vector<8x128xf32>
    %228 = arith.addf %227, %226 : vector<8x128xf32>
    %229 = arith.divf %227, %228 : vector<8x128xf32>
    %230 = vector.extract_strided_slice %223 {offsets = [0, 128], sizes = [8, 128], strides = [1, 1]} : vector<8x512xf32> to vector<8x128xf32>
    %231 = arith.negf %230 : vector<8x128xf32>
    %232 = math.exp %231 : vector<8x128xf32>
    %cst_75 = arith.constant 1.000000e+00 : f32
    %233 = vector.broadcast %cst_75 : f32 to vector<8x128xf32>
    %234 = arith.addf %233, %232 : vector<8x128xf32>
    %235 = arith.divf %233, %234 : vector<8x128xf32>
    %236 = vector.extract_strided_slice %223 {offsets = [0, 256], sizes = [8, 128], strides = [1, 1]} : vector<8x512xf32> to vector<8x128xf32>
    %237 = math.tanh %236 : vector<8x128xf32>
    %238 = vector.extract_strided_slice %223 {offsets = [0, 384], sizes = [8, 128], strides = [1, 1]} : vector<8x512xf32> to vector<8x128xf32>
    %239 = arith.negf %238 : vector<8x128xf32>
    %240 = math.exp %239 : vector<8x128xf32>
    %cst_76 = arith.constant 1.000000e+00 : f32
    %241 = vector.broadcast %cst_76 : f32 to vector<8x128xf32>
    %242 = arith.addf %241, %240 : vector<8x128xf32>
    %243 = arith.divf %241, %242 : vector<8x128xf32>
    %244 = arith.mulf %235, %212 : vector<8x128xf32>
    %245 = arith.mulf %229, %237 : vector<8x128xf32>
    %246 = arith.addf %244, %245 : vector<8x128xf32>
    %247 = math.tanh %246 : vector<8x128xf32>
    %248 = arith.mulf %243, %247 : vector<8x128xf32>
    %249 = arith.truncf %248 : vector<8x128xf32> to vector<8x128xbf16>
    %c6_77 = arith.constant 6 : index
    %c0_78 = arith.constant 0 : index
    %c0_79 = arith.constant 0 : index
    %250 = vector.load %arg5[%c6_77, %c0_78, %c0_79] : memref<8x8x128xbf16, #tpu.memory_space<vmem>>, vector<1x8x128xbf16>
    %251 = vector.shape_cast %250 : vector<1x8x128xbf16> to vector<8x128xbf16>
    %252 = vector.shape_cast %249 : vector<8x128xbf16> to vector<1x8x128xbf16>
    tpu.vector_store %arg5[%c6_77, %c0_78, %c0_79], %252 {strides = array<i32>} : memref<8x8x128xbf16, #tpu.memory_space<vmem>>, vector<1x8x128xbf16>,
    %c7 = arith.constant 7 : index
    %c0_80 = arith.constant 0 : index
    %c0_81 = arith.constant 0 : index
    %253 = vector.load %arg8[%c7, %c0_80, %c0_81] : memref<8x8x512xf32, #tpu.memory_space<vmem>>, vector<1x8x512xf32>
    %254 = vector.shape_cast %253 : vector<1x8x512xf32> to vector<8x512xf32>
    %255 = arith.truncf %248 : vector<8x128xf32> to vector<8x128xbf16>
    %cst_82 = arith.constant dense<0.000000e+00> : vector<8x512xf32>
    %256 = tpu.matmul %255, %4, %cst_82 {dimension_numbers = #tpu.dot_dimension_numbers<[1], [0], [0], [1], [0, 0, 1, 1], [], []>} : vector<8x128xbf16>, vector<128x512xbf16>, vector<8x512xf32> -> vector<8x512xf32>
    %257 = arith.addf %254, %256 : vector<8x512xf32>
    %258 = vector.extract_strided_slice %257 {offsets = [0, 0], sizes = [8, 128], strides = [1, 1]} : vector<8x512xf32> to vector<8x128xf32>
    %259 = arith.negf %258 : vector<8x128xf32>
    %260 = math.exp %259 : vector<8x128xf32>
    %cst_83 = arith.constant 1.000000e+00 : f32
    %261 = vector.broadcast %cst_83 : f32 to vector<8x128xf32>
    %262 = arith.addf %261, %260 : vector<8x128xf32>
    %263 = arith.divf %261, %262 : vector<8x128xf32>
    %264 = vector.extract_strided_slice %257 {offsets = [0, 128], sizes = [8, 128], strides = [1, 1]} : vector<8x512xf32> to vector<8x128xf32>
    %265 = arith.negf %264 : vector<8x128xf32>
    %266 = math.exp %265 : vector<8x128xf32>
    %cst_84 = arith.constant 1.000000e+00 : f32
    %267 = vector.broadcast %cst_84 : f32 to vector<8x128xf32>
    %268 = arith.addf %267, %266 : vector<8x128xf32>
    %269 = arith.divf %267, %268 : vector<8x128xf32>
    %270 = vector.extract_strided_slice %257 {offsets = [0, 256], sizes = [8, 128], strides = [1, 1]} : vector<8x512xf32> to vector<8x128xf32>
    %271 = math.tanh %270 : vector<8x128xf32>
    %272 = vector.extract_strided_slice %257 {offsets = [0, 384], sizes = [8, 128], strides = [1, 1]} : vector<8x512xf32> to vector<8x128xf32>
    %273 = arith.negf %272 : vector<8x128xf32>
    %274 = math.exp %273 : vector<8x128xf32>
    %cst_85 = arith.constant 1.000000e+00 : f32
    %275 = vector.broadcast %cst_85 : f32 to vector<8x128xf32>
    %276 = arith.addf %275, %274 : vector<8x128xf32>
    %277 = arith.divf %275, %276 : vector<8x128xf32>
    %278 = arith.mulf %269, %246 : vector<8x128xf32>
    %279 = arith.mulf %263, %271 : vector<8x128xf32>
    %280 = arith.addf %278, %279 : vector<8x128xf32>
    %281 = math.tanh %280 : vector<8x128xf32>
    %282 = arith.mulf %277, %281 : vector<8x128xf32>
    %283 = arith.truncf %282 : vector<8x128xf32> to vector<8x128xbf16>
    %c7_86 = arith.constant 7 : index
    %c0_87 = arith.constant 0 : index
    %c0_88 = arith.constant 0 : index
    %284 = vector.load %arg5[%c7_86, %c0_87, %c0_88] : memref<8x8x128xbf16, #tpu.memory_space<vmem>>, vector<1x8x128xbf16>
    %285 = vector.shape_cast %284 : vector<1x8x128xbf16> to vector<8x128xbf16>
    %286 = vector.shape_cast %283 : vector<8x128xbf16> to vector<1x8x128xbf16>
    tpu.vector_store %arg5[%c7_86, %c0_87, %c0_88], %286 {strides = array<i32>} : memref<8x8x128xbf16, #tpu.memory_space<vmem>>, vector<1x8x128xbf16>,
    %c0_89 = arith.constant 0 : index
    %c0_90 = arith.constant 0 : index
    %287 = vector.load %arg9[%c0_89, %c0_90] : memref<8x128xf32, #tpu.memory_space<vmem>>, vector<8x128xf32>
    tpu.vector_store %arg9[%c0_89, %c0_90], %282 {strides = array<i32>} : memref<8x128xf32, #tpu.memory_space<vmem>>, vector<8x128xf32>,
    %c0_91 = arith.constant 0 : index
    %c0_92 = arith.constant 0 : index
    %288 = vector.load %arg10[%c0_91, %c0_92] : memref<8x128xf32, #tpu.memory_space<vmem>>, vector<8x128xf32>
    tpu.vector_store %arg10[%c0_91, %c0_92], %280 {strides = array<i32>} : memref<8x128xf32, #tpu.memory_space<vmem>>, vector<8x128xf32>,
    %c0_i32_93 = arith.constant 0 : i32
    %289 = arith.cmpi eq, %arg0, %c0_i32_93 : i32
    %290 = arith.extui %289 : i1 to i32
    %c0_i32_94 = arith.constant 0 : i32
    %291 = arith.cmpi ne, %290, %c0_i32_94 : i32
    scf.if %291 {
      %c0_95 = arith.constant 0 : index
      %c0_96 = arith.constant 0 : index
      %292 = vector.load %arg6[%c0_95, %c0_96] : memref<8x128xf32, #tpu.memory_space<vmem>>, vector<8x128xf32>
      tpu.vector_store %arg6[%c0_95, %c0_96], %282 {strides = array<i32>} : memref<8x128xf32, #tpu.memory_space<vmem>>, vector<8x128xf32>,
      %c0_97 = arith.constant 0 : index
      %c0_98 = arith.constant 0 : index
      %293 = vector.load %arg7[%c0_97, %c0_98] : memref<8x128xf32, #tpu.memory_space<vmem>>, vector<8x128xf32>
      tpu.vector_store %arg7[%c0_97, %c0_98], %280 {strides = array<i32>} : memref<8x128xf32, #tpu.memory_space<vmem>>, vector<8x128xf32>,
    } else {
    }
    return
  }
  func.func @transform_0(%arg0: i32) -> (i32, i32, i32) {
    %c0_i32 = arith.constant 0 : i32
    %c0_i32_0 = arith.constant 0 : i32
    %c0_i32_1 = arith.constant 0 : i32
    return %arg0, %c0_i32, %c0_i32_0 : i32, i32, i32
  }
  func.func @transform_1(%arg0: i32) -> (i32, i32) {
    %c0_i32 = arith.constant 0 : i32
    %c0_i32_0 = arith.constant 0 : i32
    %c0_i32_1 = arith.constant 0 : i32
    return %c0_i32, %c0_i32_0 : i32, i32
  }
  func.func @transform_2(%arg0: i32) -> (i32, i32) {
    %c0_i32 = arith.constant 0 : i32
    %c0_i32_0 = arith.constant 0 : i32
    %c0_i32_1 = arith.constant 0 : i32
    return %c0_i32, %c0_i32_0 : i32, i32
  }
  func.func @transform_3(%arg0: i32) -> (i32, i32) {
    %c0_i32 = arith.constant 0 : i32
    %c0_i32_0 = arith.constant 0 : i32
    %c0_i32_1 = arith.constant 0 : i32
    return %c0_i32, %c0_i32_0 : i32, i32
  }
  func.func @transform_4(%arg0: i32) -> (i32, i32, i32) {
    %c0_i32 = arith.constant 0 : i32
    %c0_i32_0 = arith.constant 0 : i32
    %c0_i32_1 = arith.constant 0 : i32
    return %arg0, %c0_i32, %c0_i32_0 : i32, i32, i32
  }
  func.func @transform_5(%arg0: i32) -> (i32, i32) {
    %c0_i32 = arith.constant 0 : i32
    %c0_i32_0 = arith.constant 0 : i32
    %c0_i32_1 = arith.constant 0 : i32
    return %c0_i32, %c0_i32_0 : i32, i32
  }
  func.func @transform_6(%arg0: i32) -> (i32, i32) {
    %c0_i32 = arith.constant 0 : i32
    %c0_i32_0 = arith.constant 0 : i32
    %c0_i32_1 = arith.constant 0 : i32
    return %c0_i32, %c0_i32_0 : i32, i32
  }
}

</mosaic_0001>

<bundles_post_ra>
// kernel: tpu_custom_call.1
= control target key start
LH: loop header
LB: loop body
LE: loop exit
PB: predicated region body
PF: predicated region fallthrough
CT: control target
= control target key end

     0   :  { %12 = vsyncpa [#allocation6], 0  ;;  %s2563_s0 = inlined_call_operand.hbm [shape: bf16[8,8,16], index: 0, kind: input, shape index: {}]   ;;  %s2564_s1 = inlined_call_operand.hbm [shape: bf16[16,512], index: 1, kind: input, shape index: {}]   ;;  %s2565_s2 = inlined_call_operand.hbm [shape: bf16[128,512], index: 2, kind: input, shape index: {}]   ;;  %s2566_s3 = inlined_call_operand.vmem [shape: f32[1,512], index: 3, kind: input, shape index: {}]   ;;  %s2567_s4 = inlined_call_operand.hbm [shape: bf16[8,8,128], index: 4, kind: output, shape index: {0}]   ;;  %s2568_s5 = inlined_call_operand.hbm [shape: f32[8,128], index: 5, kind: output, shape index: {1}]   ;;  %s2569_s6 = inlined_call_operand.hbm [shape: f32[8,128], index: 6, kind: output, shape index: {2}]  }
   0x1   :  { %13 = vsyncpa [#allocation9], 0 }
   0x2   :  { %14 = vsyncpa [#allocation7], 0 }
   0x3   :  { %15 = vsyncpa [#allocation13], 0  ;;  %s1954_s21 = smov [#allocation8]  }
   0x4   :  { %s33_s22 = sshll.u32 %s1954_s21, 4  ;;  %s34_s22 = int_to_ptr.vmem [resolvable:$true] %s33_s22 }
   0x5   :  { %s1834_s23 = scalar_lea.vmem %s34_s22, 512  ;;  %p1839_p1 = scmp.lt.s32.totalorder %s34_s22, %s34_s22 }
   0x6   :  { %p1835_p0 = scmp.ne.s32.totalorder %s34_s22, %s1834_s23  ;;  %p1840_p2 = scmp.lt.s32.totalorder %s1834_s23, %s1834_s23 }
   0x8   :  { %p1841_p3 = por %p1840_p2, %p1839_p1 }
   0xa   :  { %p1842_p4 = pnand %p1841_p3, %p1835_p0 }
   0xc   :  { %1845 = shalt.err (!%p1842_p4)
}
   0xd   :  { %s1955_s24 = smov 256   ;;  %s1956_s25 = smov 16  }
   0xe   :  { %39 = dma.hbm_to_vmem [thread:$0]  %s2564_s1, 512, %s34_s22, [#allocation9], %s1955_s24, %s1955_s24, %s1956_s25  }
   0xf   :  { %s1957_s28 = smov [#allocation5]  }
  0x10   :  { %s21_s29 = sshll.u32 %s1957_s28, 4  ;;  %s22_s29 = int_to_ptr.vmem [resolvable:$true] %s21_s29 }
  0x11   :  { %s1854_s30 = scalar_lea.vmem %s22_s29, 512  ;;  %p1859_p6 = scmp.lt.s32.totalorder %s22_s29, %s22_s29 }
  0x12   :  { %p1855_p5 = scmp.ne.s32.totalorder %s22_s29, %s1854_s30  ;;  %p1860_p7 = scmp.lt.s32.totalorder %s1854_s30, %s1854_s30 }
  0x14   :  { %p1861_p8 = por %p1860_p7, %p1859_p6 }
  0x16   :  { %p1862_p9 = pnand %p1861_p8, %p1855_p5 }
  0x18   :  { %1865 = shalt.err (!%p1862_p9)
}
  0x19   :  { %s1958_s7 = smov 64   ;;  %s1959_s8 = smov 4  }
  0x1a   :  { %27 = dma.hbm_to_vmem [thread:$0]  %s2563_s0, 512, %s22_s29, [#allocation6], %s1958_s7, %s1958_s7, %s1959_s8  }
  0x1b   :  { %s1960_s1 = smov [#allocation10]  }
  0x1c   :  { %s45_s11 = sshll.u32 %s1960_s1, 4  ;;  %s46_s11 = int_to_ptr.vmem [resolvable:$true] %s45_s11 }
  0x1d   :  { %s1874_s12 = scalar_lea.vmem %s46_s11, 4096  ;;  %p1879_p11 = scmp.lt.s32.totalorder %s46_s11, %s46_s11 }
  0x1e   :  { %p1875_p10 = scmp.ne.s32.totalorder %s46_s11, %s1874_s12  ;;  %p1880_p12 = scmp.lt.s32.totalorder %s1874_s12, %s1874_s12 }
  0x20   :  { %p1881_p13 = por %p1880_p12, %p1879_p11 }
  0x22   :  { %p1882_p0 = pnand %p1881_p13, %p1875_p10 }
  0x24   :  { %1885 = shalt.err (!%p1882_p0)
}
  0x25   :  { %51 = dma.hbm_to_vmem [thread:$0]  %s2565_s2, 4096, %s46_s11, [#allocation9], %s1955_s24, %s1955_s24, %s1956_s25  }
  0x26   :  { %1946 = dma.done.wait [#allocation6], 512  }
  0x27   :  { %1947 = vsyncadd [#allocation6], 4294966784 }
  0x28   :  { %1948 = dma.done.wait [#allocation9], 4608  }
  0x29   :  { %1949 = vsyncadd [#allocation9], 4294962688  ;;  %v2570_v0 = vmov 0   ;;  %v1608_v1 = vld [vmem:[#allocation8 + $0x4] ss:$16 sps:$4 sm:$0xff]   ;;  %vm176_vm0 = vcmask 130048   ;;  %v116_v42 = vlaneseq }
  0x2a   :  { %221 = vmatprep.mubr.bf16.mxu0 %v2570_v0  ;;  %294 = vmatprep.mubr.bf16.mxu1 %v2570_v0  ;;  %v1610_v2 = vld [vmem:[#allocation8 + $0xc] ss:$16 sps:$4 sm:$0xff]   ;;  %v1612_v3 = vld [vmem:[#allocation8] ss:$16 sps:$4 sm:$0xff]   ;;  %v1613_v4 = vld [vmem:[#allocation8 + $0x8] ss:$16 sps:$4 sm:$0xff]  }
  0x2b   :  { %203 = vmatprep.subr.bf16.mxu0 %v1608_v1  ;;  %276 = vmatprep.subr.bf16.mxu1 %v1610_v2  ;;  %v1614_v5 = vld [vmem:[#allocation5] sm:$0xff]   ;;  %v2017_v7 = vld [vmem:[#allocation10 + $0xec] ss:$16 sps:$4 sm:$0xff]   ;;  %v2022_v9 = vld [vmem:[#allocation10 + $0xe8] ss:$16 sps:$4 sm:$0xff]   ;;  %v1962_v41 = vmov 0.0|0.0  }
  0x2c   :  { %204 = vmatpush1.bf16.msra.mxu0 %v1612_v3  ;;  %277 = vmatpush1.bf16.msra.mxu1 %v1613_v4  ;;  %v2015_v6 = vld [vmem:[#allocation10 + $0xe4] ss:$16 sps:$4 sm:$0xff]   ;;  %v2019_v8 = vld [vmem:[#allocation10 + $0xe0] ss:$16 sps:$4 sm:$0xff]   ;;  %v2030_v11 = vld [vmem:[#allocation10 + $0xcc] ss:$16 sps:$4 sm:$0xff]  }
  0x2d   :  { %534 = vmatprep.subr.bf16.mxu0 %v2015_v6  ;;  %v2026_v10 = vld [vmem:[#allocation10 + $0xc4] ss:$16 sps:$4 sm:$0xff]   ;;  %575 = vmatprep.subr.bf16.mxu1 %v2017_v7  ;;  %v2032_v12 = vld [vmem:[#allocation10 + $0xc0] ss:$16 sps:$4 sm:$0xff]   ;;  %v2034_v13 = vld [vmem:[#allocation10 + $0xc8] ss:$16 sps:$4 sm:$0xff]  }
  0x2e   :  { %v1627_v14 = vld [vmem:[#allocation5 + $0x8] sm:$0xff]   ;;  %v2040_v15 = vld [vmem:[#allocation10 + $0xa4] ss:$16 sps:$4 sm:$0xff]   ;;  %v2046_v17 = vld [vmem:[#allocation10 + $0xa0] ss:$16 sps:$4 sm:$0xff]   ;;  %v117_v43 = vshrl.u32 %v116_v42, 7 }
  0x2f   :  { %1532 = vmatmul.mubr.msk.bf16.vlgmr.msra.gmra.mxu0 %vm176_vm0, %v1614_v5  ;;  %1536 = vmatmul.mubr.msk.bf16.vlgmr.msra.gmra.mxu1 %vm176_vm0, %v1614_v5  ;;  %v2043_v16 = vld [vmem:[#allocation10 + $0xac] ss:$16 sps:$4 sm:$0xff]   ;;  %v2048_v18 = vld [vmem:[#allocation10 + $0xa8] ss:$16 sps:$4 sm:$0xff]   ;;  %v2052_v19 = vld [vmem:[#allocation10 + $0x84] ss:$16 sps:$4 sm:$0xff]  }
  0x30   :  { %535 = vmatpush1.bf16.msra.mxu0 %v2019_v8  ;;  %576 = vmatpush1.bf16.msra.mxu1 %v2022_v9  ;;  %v2055_v20 = vld [vmem:[#allocation10 + $0x8c] ss:$16 sps:$4 sm:$0xff]   ;;  %v2059_v21 = vld [vmem:[#allocation10 + $0x80] ss:$16 sps:$4 sm:$0xff]   ;;  %v2062_v22 = vld [vmem:[#allocation10 + $0x88] ss:$16 sps:$4 sm:$0xff]  }
  0x31   :  { %536 = vmatprep.subr.bf16.mxu0 %v2026_v10  ;;  %577 = vmatprep.subr.bf16.mxu1 %v2030_v11  ;;  %v2067_v23 = vld [vmem:[#allocation10 + $0x64] ss:$16 sps:$4 sm:$0xff]   ;;  %v2071_v24 = vld [vmem:[#allocation10 + $0x6c] ss:$16 sps:$4 sm:$0xff]   ;;  %v2074_v26 = vld [vmem:[#allocation10 + $0x60] ss:$16 sps:$4 sm:$0xff]  }
  0x32   :  { %231 = vmatprep.mubr.bf16.mxu0 %v2570_v0  ;;  %304 = vmatprep.mubr.bf16.mxu1 %v2570_v0  ;;  %v1640_v25 = vld [vmem:[#allocation5 + $0x10] sm:$0xff]   ;;  %v2078_v27 = vld [vmem:[#allocation10 + $0x68] ss:$16 sps:$4 sm:$0xff]   ;;  %v2083_v29 = vld [vmem:[#allocation10 + $0x4c] ss:$16 sps:$4 sm:$0xff]   ;;  %v126_v44 = vsub.s32 2, %v117_v43 }
  0x33   :  { %v2080_v28 = vld [vmem:[#allocation10 + $0x44] ss:$16 sps:$4 sm:$0xff]   ;;  %v2088_v30 = vld [vmem:[#allocation10 + $0x40] ss:$16 sps:$4 sm:$0xff]   ;;  %v2090_v31 = vld [vmem:[#allocation10 + $0x48] ss:$16 sps:$4 sm:$0xff]  }
  0x34   :  { %537 = vmatpush1.bf16.msra.mxu0 %v2032_v12  ;;  %578 = vmatpush1.bf16.msra.mxu1 %v2034_v13  ;;  %v2095_v32 = vld [vmem:[#allocation10 + $0x24] ss:$16 sps:$4 sm:$0xff]   ;;  %v2099_v33 = vld [vmem:[#allocation10 + $0x2c] ss:$16 sps:$4 sm:$0xff]   ;;  %v2102_v35 = vld [vmem:[#allocation10 + $0x20] ss:$16 sps:$4 sm:$0xff]  }
  0x35   :  { %538 = vmatprep.subr.bf16.mxu0 %v2040_v15  ;;  %579 = vmatprep.subr.bf16.mxu1 %v2043_v16  ;;  %v1653_v34 = vld [vmem:[#allocation5 + $0x18] sm:$0xff]   ;;  %v2108_v37 = vld [vmem:[#allocation10 + $0x4] ss:$16 sps:$4 sm:$0xff]   ;;  %v2116_v39 = vld [vmem:[#allocation10] ss:$16 sps:$4 sm:$0xff]   ;;  %v118_v45 = vsub.s32 0, %v117_v43 }
  0x36   :  { %v2106_v36 = vld [vmem:[#allocation10 + $0x28] ss:$16 sps:$4 sm:$0xff]   ;;  %v2111_v38 = vld [vmem:[#allocation10 + $0xc] ss:$16 sps:$4 sm:$0xff]   ;;  %v130_v46 = vsub.s32 3, %v117_v43  ;;  %v122_v51 = vsub.s32 1, %v117_v43 }
  0x37   :  { %1533 = vmatmul.mubr.msk.bf16.gmra.mxu0 %vm176_vm0, %v1627_v14  ;;  %1537 = vmatmul.mubr.msk.bf16.gmra.mxu1 %vm176_vm0, %v1627_v14  ;;  %v2121_v40 = vld [vmem:[#allocation10 + $0x8] ss:$16 sps:$4 sm:$0xff]   ;;  %v114_v47 = vld [vmem:[%s2566_s3] sm:$0xf]  ;;  %s1963_s3 = smov [#allocation12]   ;;  %s1964_s16 = smov [#allocation14]  }
  0x38   :  { %539 = vmatpush1.bf16.msra.mxu0 %v2046_v17  ;;  %241 = vmatprep.mubr.bf16.mxu0 %v2570_v0  ;;  %v2170_v50 = vrot.slane %v114_v47, %v126_v44  ;;  %v119_v54 = vrot.slane %v114_v47, %v118_v45  ;;  %v2176_v55 = vrot.slane %v114_v47, %v130_v46  ;;  %s1497_s15 = sshll.u32 %s1963_s3, 4  ;;  %s1507_s17 = sshll.u32 %s1964_s16, 4  ;;  %s1498_s15 = int_to_ptr.vmem [resolvable:$true] %s1497_s15  ;;  %s1508_s17 = int_to_ptr.vmem [resolvable:$true] %s1507_s17 }
  0x39   :  { %580 = vmatpush1.bf16.msra.mxu1 %v2048_v18  ;;  %540 = vmatprep.subr.bf16.mxu0 %v2052_v19  ;;  %v123_v58 = vrot.slane %v114_v47, %v122_v51  ;;  %s1965_s18 = smov [#allocation11]   ;;  %s1886_s20 = scalar_lea.vmem %s1498_s15, 128 }
  0x3a   :  { %581 = vmatprep.subr.bf16.mxu1 %v2055_v20  ;;  %314 = vmatprep.mubr.bf16.mxu1 %v2570_v0  ;;  %s1484_s19 = sshll.u32 %s1965_s18, 4  ;;  %p1887_p1 = scmp.ne.s32.totalorder %s1498_s15, %s1886_s20  ;;  %s1485_s19 = int_to_ptr.vmem [resolvable:$true] %s1484_s19 }
  0x3b   :  { %p1891_p2 = scmp.lt.s32.totalorder %s1498_s15, %s1498_s15  ;;  %p1892_p3 = scmp.lt.s32.totalorder %s1886_s20, %s1886_s20 }
  0x3c   :  { %541 = vmatpush1.bf16.msra.mxu0 %v2059_v21 }
  0x3d   :  { %582 = vmatpush1.bf16.msra.mxu1 %v2062_v22  ;;  %542 = vmatprep.subr.bf16.mxu0 %v2067_v23  ;;  %p1893_p4 = por %p1892_p3, %p1891_p2 }
  0x3e   :  { %583 = vmatprep.subr.bf16.mxu1 %v2071_v24 }
  0x3f   :  { %1534 = vmatmul.mubr.msk.bf16.gmra.mxu0 %vm176_vm0, %v1640_v25  ;;  %1538 = vmatmul.mubr.msk.bf16.gmra.mxu1 %vm176_vm0, %v1640_v25  ;;  %p1894_p5 = pnand %p1893_p4, %p1887_p1 }
  0x40   :  { %543 = vmatpush1.bf16.msra.mxu0 %v2074_v26  ;;  %251 = vmatprep.mubr.bf16.mxu0 %v2570_v0 }
  0x41   :  { %584 = vmatpush1.bf16.msra.mxu1 %v2078_v27  ;;  %544 = vmatprep.subr.bf16.mxu0 %v2080_v28 }
  0x42   :  { %585 = vmatprep.subr.bf16.mxu1 %v2083_v29  ;;  %324 = vmatprep.mubr.bf16.mxu1 %v2570_v0 }
  0x44   :  { %545 = vmatpush1.bf16.msra.mxu0 %v2088_v30 }
  0x45   :  { %586 = vmatpush1.bf16.msra.mxu1 %v2090_v31  ;;  %546 = vmatprep.subr.bf16.mxu0 %v2095_v32 }
  0x46   :  { %587 = vmatprep.subr.bf16.mxu1 %v2099_v33 }
  0x47   :  { %1535 = vmatmul.mubr.msk.bf16.gmra.mxu0 %vm176_vm0, %v1653_v34  ;;  %1539 = vmatmul.mubr.msk.bf16.gmra.mxu1 %vm176_vm0, %v1653_v34 }
  0x48   :  { %547 = vmatpush1.bf16.msra.mxu0 %v2102_v35  ;;  %566 = vmatprep.mubr.bf16.mxu0 %v2570_v0 }
  0x49   :  { %588 = vmatpush1.bf16.msra.mxu1 %v2106_v36  ;;  %548 = vmatprep.subr.bf16.mxu0 %v2108_v37 }
  0x4a   :  { %589 = vmatprep.subr.bf16.mxu1 %v2111_v38  ;;  %607 = vmatprep.mubr.bf16.mxu1 %v2570_v0 }
  0x4c   :  { %549 = vmatpush1.bf16.msra.mxu0 %v2116_v39 }
  0x4d   :  { %590 = vmatpush1.bf16.msra.mxu1 %v2121_v40  ;;  %651 = vmatprep.subr.bf16.mxu0 %v2015_v6 }
  0x4e   :  { %692 = vmatprep.subr.bf16.mxu1 %v2017_v7 }
  0x4f   :  { %567 = vmatmul.mubr.bf16.vlgmr.msra.gmra.mxu0 %v1962_v41 }
  0x50   :  { %608 = vmatmul.mubr.bf16.vlgmr.msra.gmra.mxu1 %v1962_v41  ;;  %652 = vmatpush1.bf16.msra.mxu0 %v2019_v8 }
  0x51   :  { %693 = vmatpush1.bf16.msra.mxu1 %v2022_v9  ;;  %653 = vmatprep.subr.bf16.mxu0 %v2026_v10 }
  0x52   :  { %694 = vmatprep.subr.bf16.mxu1 %v2030_v11  ;;  %683 = vmatprep.mubr.bf16.mxu0 %v2570_v0 }
  0x53   :  { %724 = vmatprep.mubr.bf16.mxu1 %v2570_v0 }
  0x54   :  { %654 = vmatpush1.bf16.msra.mxu0 %v2032_v12 }
  0x55   :  { %695 = vmatpush1.bf16.msra.mxu1 %v2034_v13  ;;  %655 = vmatprep.subr.bf16.mxu0 %v2040_v15 }
  0x56   :  { %696 = vmatprep.subr.bf16.mxu1 %v2043_v16 }
  0x58   :  { %656 = vmatpush1.bf16.msra.mxu0 %v2046_v17 }
  0x59   :  { %697 = vmatpush1.bf16.msra.mxu1 %v2048_v18  ;;  %657 = vmatprep.subr.bf16.mxu0 %v2052_v19 }
  0x5a   :  { %698 = vmatprep.subr.bf16.mxu1 %v2055_v20 }
  0x5c   :  { %658 = vmatpush1.bf16.msra.mxu0 %v2059_v21 }
  0x5d   :  { %699 = vmatpush1.bf16.msra.mxu1 %v2062_v22  ;;  %659 = vmatprep.subr.bf16.mxu0 %v2067_v23 }
  0x5e   :  { %700 = vmatprep.subr.bf16.mxu1 %v2071_v24 }
  0x60   :  { %660 = vmatpush1.bf16.msra.mxu0 %v2074_v26 }
  0x61   :  { %701 = vmatpush1.bf16.msra.mxu1 %v2078_v27  ;;  %661 = vmatprep.subr.bf16.mxu0 %v2080_v28 }
  0x62   :  { %702 = vmatprep.subr.bf16.mxu1 %v2083_v29 }
  0x64   :  { %662 = vmatpush1.bf16.msra.mxu0 %v2088_v30 }
  0x65   :  { %703 = vmatpush1.bf16.msra.mxu1 %v2090_v31  ;;  %663 = vmatprep.subr.bf16.mxu0 %v2095_v32 }
  0x66   :  { %704 = vmatprep.subr.bf16.mxu1 %v2099_v33 }
  0x68   :  { %664 = vmatpush1.bf16.msra.mxu0 %v2102_v35 }
  0x69   :  { %705 = vmatpush1.bf16.msra.mxu1 %v2106_v36  ;;  %665 = vmatprep.subr.bf16.mxu0 %v2108_v37 }
  0x6a   :  { %706 = vmatprep.subr.bf16.mxu1 %v2111_v38 }
  0x6c   :  { %666 = vmatpush1.bf16.msra.mxu0 %v2116_v39 }
  0x6d   :  { %707 = vmatpush1.bf16.msra.mxu1 %v2121_v40  ;;  %769 = vmatprep.subr.bf16.mxu0 %v2015_v6 }
  0x6e   :  { %810 = vmatprep.subr.bf16.mxu1 %v2017_v7 }
  0xef   :  { %v2166_v48 = vpop.f32.mrf.mxu0  ;;  %v2168_v49 = vpop.f32.mrf.mxu1 }
  0xf1   :  { %v2172_v52 = vpop.f32.mrf.mxu0  ;;  %v2174_v53 = vpop.f32.mrf.mxu1 }
  0xf3   :  { %v227_v56 = vpop.f32.mrf.mxu0  ;;  %v300_v57 = vpop.f32.mrf.mxu1 }
  0xf4   :  { %v2178_v59 = vadd.f32 %v227_v56, %v119_v54  ;;  %v2181_v60 = vadd.f32 %v300_v57, %v2170_v50 }
  0xf5   :  { %v229_v61 = vpop.f32.mrf.mxu0  ;;  %v302_v62 = vpop.f32.mrf.mxu1 }
  0xf6   :  { %v2183_v63 = vadd.f32 %v229_v61, %v123_v58  ;;  %v2186_v1 = vadd.f32 %v302_v62, %v2176_v55 }
  0xf7   :  { %v233_v2 = vpop.f32.mrf.mxu0  ;;  %v306_v3 = vpop.f32.mrf.mxu1 }
  0xf8   :  { %v2188_v4 = vadd.f32 %v233_v2, %v119_v54  ;;  %v2191_v5 = vadd.f32 %v306_v3, %v2170_v50 }
  0xf9   :  { %v235_v14 = vpop.f32.mrf.mxu0  ;;  %v308_v25 = vpop.f32.mrf.mxu1 }
  0xfa   :  { %2572 = vst [vmem:[#allocation19_spill] sm:$0xff] %v2191_v5  ;;  %v2193_v34 = vadd.f32 %v235_v14, %v123_v58  ;;  %v2196_v41 = vadd.f32 %v308_v25, %v2176_v55 }
  0xfb   :  { %v237_v42 = vpop.f32.mrf.mxu0  ;;  %v310_v43 = vpop.f32.mrf.mxu1 }
  0xfc   :  { %v2198_v44 = vadd.f32 %v237_v42, %v119_v54  ;;  %v2201_v45 = vadd.f32 %v310_v43, %v2170_v50 }
  0xfd   :  { %v239_v46 = vpop.f32.mrf.mxu0  ;;  %v312_v47 = vpop.f32.mrf.mxu1 }
  0xfe   :  { %2573 = vst [vmem:[#allocation20_spill] sm:$0xff] %v2198_v44  ;;  %2574 = vst [vmem:[#allocation21_spill] sm:$0xff] %v2201_v45  ;;  %v2203_v51 = vadd.f32 %v239_v46, %v123_v58  ;;  %v2206_v56 = vadd.f32 %v312_v47, %v2176_v55 }
  0xff   :  { %v243_v57 = vpop.f32.mrf.mxu0  ;;  %v316_v61 = vpop.f32.mrf.mxu1 }
 0x100   :  { %2575 = vst [vmem:[#allocation22_spill] sm:$0xff] %v2203_v51  ;;  %2576 = vst [vmem:[#allocation23_spill] sm:$0xff] %v2206_v56  ;;  %v2208_v62 = vadd.f32 %v243_v57, %v119_v54  ;;  %v2211_v2 = vadd.f32 %v316_v61, %v2170_v50 }
 0x101   :  { %v245_v3 = vpop.f32.mrf.mxu0  ;;  %v318_v14 = vpop.f32.mrf.mxu1 }
 0x102   :  { %2577 = vst [vmem:[#allocation24_spill] sm:$0xff] %v2208_v62  ;;  %2578 = vst [vmem:[#allocation25_spill] sm:$0xff] %v2211_v2  ;;  %v2213_v25 = vadd.f32 %v245_v3, %v123_v58  ;;  %v2216_v42 = vadd.f32 %v318_v14, %v2176_v55 }
 0x103   :  { %v247_v43 = vpop.f32.mrf.mxu0  ;;  %v320_v46 = vpop.f32.mrf.mxu1 }
 0x104   :  { %2579 = vst [vmem:[#allocation26_spill] sm:$0xff] %v2213_v25  ;;  %2580 = vst [vmem:[#allocation27_spill] sm:$0xff] %v2216_v42  ;;  %v2218_v0 = vadd.f32 %v247_v43, %v119_v54  ;;  %v2221_v47 = vadd.f32 %v320_v46, %v2170_v50 }
 0x105   :  { %v249_v45 = vpop.f32.mrf.mxu0  ;;  %v322_v57 = vpop.f32.mrf.mxu1 }
 0x106   :  { %2581 = vst [vmem:[#allocation28_spill] sm:$0xff] %v2218_v0  ;;  %2582 = vst [vmem:[#allocation29_spill] sm:$0xff] %v2221_v47  ;;  %v2223_v62 = vadd.f32 %v249_v45, %v123_v58  ;;  %v2226_v61 = vadd.f32 %v322_v57, %v2176_v55 }
 0x107   :  { %v253_v2 = vpop.f32.mrf.mxu0  ;;  %v326_v3 = vpop.f32.mrf.mxu1 }
 0x108   :  { %2583 = vst [vmem:[#allocation30_spill] sm:$0xff] %v2223_v62  ;;  %2584 = vst [vmem:[#allocation31_spill] sm:$0xff] %v2226_v61  ;;  %v2228_v25 = vadd.f32 %v253_v2, %v119_v54  ;;  %v2231_v14 = vadd.f32 %v326_v3, %v2170_v50 }
 0x109   :  { %v255_v42 = vpop.f32.mrf.mxu0  ;;  %v328_v43 = vpop.f32.mrf.mxu1 }
 0x10a   :  { %2585 = vst [vmem:[#allocation32_spill] sm:$0xff] %v2228_v25  ;;  %2586 = vst [vmem:[#allocation33_spill] sm:$0xff] %v2231_v14  ;;  %v2233_v0 = vadd.f32 %v255_v42, %v123_v58  ;;  %v2236_v46 = vadd.f32 %v328_v43, %v2176_v55  ;;  %v224_v25 = vadd.f32 %v2166_v48, %v119_v54 }
 0x10b   :  { %v257_v47 = vpop.f32.mrf.mxu0  ;;  %v330_v45 = vpop.f32.mrf.mxu1  ;;  %v226_v43 = vadd.f32 %v2172_v52, %v123_v58  ;;  %v297_v52 = vadd.f32 %v2168_v49, %v2170_v50 }
 0x10c   :  { %2587 = vst [vmem:[#allocation34_spill] sm:$0xff] %v2233_v0  ;;  %2588 = vst [vmem:[#allocation35_spill] sm:$0xff] %v2236_v46  ;;  %v2238_v62 = vadd.f32 %v257_v47, %v119_v54  ;;  %v2241_v57 = vadd.f32 %v330_v45, %v2170_v50  ;;  %v299_v54 = vadd.f32 %v2174_v53, %v2176_v55 }
 0x10d   :  { %v259_v61 = vpop.f32.mrf.mxu0  ;;  %v332_v2 = vpop.f32.mrf.mxu1 }
 0x10e   :  { %2589 = vst [vmem:[#allocation36_spill] sm:$0xff] %v2238_v62  ;;  %2590 = vst [vmem:[#allocation37_spill] sm:$0xff] %v2241_v57  ;;  %v2244_v3 = vadd.f32 %v259_v61, %v123_v58  ;;  %v2247_v14 = vadd.f32 %v332_v2, %v2176_v55 }
 0x10f   :  { %v568_v42 = vpop.f32.mrf.mxu0 }
 0x110   :  { %v616_v46 = vadd.f32 %v568_v42, %v224_v25  ;;  %v609_v0 = vpop.f32.mrf.mxu1 }
 0x111   :  { %v570_v56 = vpop.f32.mrf.mxu0  ;;  %v618_v2 = vadd.f32 %v609_v0, %v297_v52 }
 0x112   :  { %v1572_v47 = vmul.f32 -1.442695, %v616_v46  ;;  %v617_v62 = vadd.f32 %v570_v56, %v226_v43  ;;  %v611_v51 = vpop.f32.mrf.mxu1 }
 0x113   :  { %v572_v45 = vpop.f32.mrf.mxu0  ;;  %v619_v61 = vadd.f32 %v611_v51, %v299_v54 }
 0x114   :  { %1666 = vpow2.f32 %v1572_v47  ;;  %v1573_v57 = vmul.f32 -1.442695, %v617_v62  ;;  %v613_v44 = vpop.f32.mrf.mxu1  ;;  %v2591_v45 = vmov 0  }
 0x115   :  { %v573_v5 = vpop.f32.mrf.mxu0  ;;  %v1574_v58 = vmul.f32 -1.442695, %v619_v61 }
 0x116   :  { %1668 = vpow2.f32 %v1573_v57  ;;  %v614_v48 = vpop.f32.mrf.mxu1 }
 0x117   :  { %1670 = vpow2.f32 %v1574_v58 }
 0x121   :  { %v1667_v25 = vpop.eup %1666 }
 0x122   :  { %v623_v46 = vadd.f32 1.0, %v1667_v25 }
 0x123   :  { %v1669_v56 = vpop.eup %1668 }
 0x124   :  { %1672 = vrcp.f32 %v623_v46  ;;  %v629_v42 = vadd.f32 1.0, %v1669_v56  ;;  %v1671_v5 = vpop.eup %1670 }
 0x125   :  { %1674 = vtanh.f32 %v618_v2  ;;  %v636_v43 = vadd.f32 1.0, %v1671_v5 }
 0x126   :  { %1676 = vrcp.f32 %v629_v42 }
 0x127   :  { %1678 = vrcp.f32 %v636_v43 }
 0x131   :  { %v1673_v44 = vpop.eup %1672 }
 0x132   :  { %v1675_v62 = vpop.eup %1674 }
 0x133   :  { %v1677_v57 = vpop.eup %1676  ;;  %v640_v55 = vmul.f32 %v1675_v62, %v1673_v44 }
 0x134   :  { %v639_v53 = vmul.f32 0.0, %v1677_v57  ;;  %v1679_v0 = vpop.eup %1678 }
 0x136   :  { %v2254_v51 = vadd.f32 %v640_v55, %v639_v53 }
 0x138   :  { %1680 = vtanh.f32 %v2254_v51 }
 0x145   :  { %v1681_v49 = vpop.eup %1680 }
 0x146   :  { %v643_v50 = vmul.f32 %v1681_v49, %v1679_v0 }
 0x148   :  { %v644_v47 = vpack.c.bf16 %v643_v50, %v643_v50 }
 0x14a   :  { %645 = vst [vmem:[#allocation11] sm:$0xf] %v644_v47  ;;  %684 = vmatmul.mubr.bf16.vlgmr.msra.gmra.mxu0 %v644_v47  ;;  %725 = vmatmul.mubr.bf16.vlgmr.msra.gmra.mxu1 %v644_v47 }
 0x14b   :  { %770 = vmatpush1.bf16.msra.mxu0 %v2019_v8  ;;  %811 = vmatpush1.bf16.msra.mxu1 %v2022_v9 }
 0x14c   :  { %771 = vmatprep.subr.bf16.mxu0 %v2026_v10  ;;  %812 = vmatprep.subr.bf16.mxu1 %v2030_v11 }
 0x14d   :  { %801 = vmatprep.mubr.bf16.mxu0 %v2591_v45  ;;  %842 = vmatprep.mubr.bf16.mxu1 %v2591_v45 }
 0x14f   :  { %772 = vmatpush1.bf16.msra.mxu0 %v2032_v12  ;;  %813 = vmatpush1.bf16.msra.mxu1 %v2034_v13 }
 0x150   :  { %773 = vmatprep.subr.bf16.mxu0 %v2040_v15  ;;  %814 = vmatprep.subr.bf16.mxu1 %v2043_v16 }
 0x153   :  { %774 = vmatpush1.bf16.msra.mxu0 %v2046_v17  ;;  %815 = vmatpush1.bf16.msra.mxu1 %v2048_v18 }
 0x154   :  { %775 = vmatprep.subr.bf16.mxu0 %v2052_v19  ;;  %816 = vmatprep.subr.bf16.mxu1 %v2055_v20 }
 0x157   :  { %776 = vmatpush1.bf16.msra.mxu0 %v2059_v21  ;;  %817 = vmatpush1.bf16.msra.mxu1 %v2062_v22 }
 0x158   :  { %777 = vmatprep.subr.bf16.mxu0 %v2067_v23  ;;  %818 = vmatprep.subr.bf16.mxu1 %v2071_v24 }
 0x15b   :  { %778 = vmatpush1.bf16.msra.mxu0 %v2074_v26  ;;  %819 = vmatpush1.bf16.msra.mxu1 %v2078_v27 }
 0x15c   :  { %779 = vmatprep.subr.bf16.mxu0 %v2080_v28  ;;  %820 = vmatprep.subr.bf16.mxu1 %v2083_v29 }
 0x15f   :  { %780 = vmatpush1.bf16.msra.mxu0 %v2088_v30  ;;  %821 = vmatpush1.bf16.msra.mxu1 %v2090_v31 }
 0x160   :  { %781 = vmatprep.subr.bf16.mxu0 %v2095_v32  ;;  %822 = vmatprep.subr.bf16.mxu1 %v2099_v33 }
 0x163   :  { %782 = vmatpush1.bf16.msra.mxu0 %v2102_v35  ;;  %823 = vmatpush1.bf16.msra.mxu1 %v2106_v36 }
 0x164   :  { %783 = vmatprep.subr.bf16.mxu0 %v2108_v37  ;;  %824 = vmatprep.subr.bf16.mxu1 %v2111_v38 }
 0x167   :  { %784 = vmatpush1.bf16.msra.mxu0 %v2116_v39  ;;  %825 = vmatpush1.bf16.msra.mxu1 %v2121_v40 }
 0x168   :  { %887 = vmatprep.subr.bf16.mxu0 %v2015_v6  ;;  %928 = vmatprep.subr.bf16.mxu1 %v2017_v7 }
 0x20a   :  { %v685_v48 = vpop.f32.mrf.mxu0  ;;  %v726_v54 = vpop.f32.mrf.mxu1 }
 0x20b   :  { %v733_v61 = vadd.f32 %v685_v48, %v2178_v59  ;;  %v735_v57 = vadd.f32 %v726_v54, %v2181_v60 }
 0x20c   :  { %v687_v52 = vpop.f32.mrf.mxu0  ;;  %v728_v58 = vpop.f32.mrf.mxu1 }
 0x20d   :  { %v1575_v25 = vmul.f32 -1.442695, %v733_v61  ;;  %v734_v2 = vadd.f32 %v687_v52, %v2183_v63  ;;  %v736_v62 = vadd.f32 %v728_v58, %v2186_v1 }
 0x20e   :  { %v689_v46 = vpop.f32.mrf.mxu0  ;;  %v730_v56 = vpop.f32.mrf.mxu1 }
 0x20f   :  { %1682 = vpow2.f32 %v1575_v25  ;;  %v1576_v42 = vmul.f32 -1.442695, %v734_v2  ;;  %v1577_v43 = vmul.f32 -1.442695, %v736_v62 }
 0x210   :  { %v690_v5 = vpop.f32.mrf.mxu0  ;;  %v731_v44 = vpop.f32.mrf.mxu1 }
 0x211   :  { %1684 = vpow2.f32 %v1576_v42 }
 0x212   :  { %1686 = vtanh.f32 %v735_v57 }
 0x213   :  { %1688 = vpow2.f32 %v1577_v43 }
 0x21c   :  { %v1683_v53 = vpop.eup %1682 }
 0x21d   :  { %v740_v55 = vadd.f32 1.0, %v1683_v53 }
 0x21e   :  { %v1685_v59 = vpop.eup %1684 }
 0x21f   :  { %1690 = vrcp.f32 %v740_v55  ;;  %v746_v0 = vadd.f32 1.0, %v1685_v59  ;;  %v1687_v63 = vpop.eup %1686 }
 0x220   :  { %v1689_v49 = vpop.eup %1688 }
 0x221   :  { %1692 = vrcp.f32 %v746_v0  ;;  %v753_v61 = vadd.f32 1.0, %v1689_v49  ;;  %v2592_v0 = vld [vmem:[#allocation19_spill] sm:$0xff] }
 0x223   :  { %1694 = vrcp.f32 %v753_v61 }
 0x22c   :  { %v1691_v50 = vpop.eup %1690 }
 0x22d   :  { %v757_v47 = vmul.f32 %v1691_v50, %v1687_v63 }
 0x22e   :  { %v1693_v48 = vpop.eup %1692 }
 0x22f   :  { %v756_v52 = vmul.f32 %v1693_v48, %v2254_v51 }
 0x230   :  { %v1695_v60 = vpop.eup %1694 }
 0x231   :  { %v2296_v1 = vadd.f32 %v757_v47, %v756_v52 }
 0x233   :  { %1696 = vtanh.f32 %v2296_v1 }
 0x240   :  { %v1697_v54 = vpop.eup %1696 }
 0x241   :  { %v760_v58 = vmul.f32 %v1697_v54, %v1695_v60 }
 0x243   :  { %v761_v25 = vpack.c.bf16 %v760_v58, %v760_v58 }
 0x245   :  { %763 = vst [vmem:[#allocation11 + $0x4] sm:$0xf] %v761_v25  ;;  %802 = vmatmul.mubr.bf16.vlgmr.msra.gmra.mxu0 %v761_v25  ;;  %843 = vmatmul.mubr.bf16.vlgmr.msra.gmra.mxu1 %v761_v25 }
 0x246   :  { %888 = vmatpush1.bf16.msra.mxu0 %v2019_v8  ;;  %929 = vmatpush1.bf16.msra.mxu1 %v2022_v9 }
 0x247   :  { %889 = vmatprep.subr.bf16.mxu0 %v2026_v10  ;;  %930 = vmatprep.subr.bf16.mxu1 %v2030_v11 }
 0x248   :  { %919 = vmatprep.mubr.bf16.mxu0 %v2591_v45  ;;  %960 = vmatprep.mubr.bf16.mxu1 %v2591_v45 }
 0x24a   :  { %890 = vmatpush1.bf16.msra.mxu0 %v2032_v12  ;;  %931 = vmatpush1.bf16.msra.mxu1 %v2034_v13 }
 0x24b   :  { %891 = vmatprep.subr.bf16.mxu0 %v2040_v15  ;;  %932 = vmatprep.subr.bf16.mxu1 %v2043_v16 }
 0x24e   :  { %892 = vmatpush1.bf16.msra.mxu0 %v2046_v17  ;;  %933 = vmatpush1.bf16.msra.mxu1 %v2048_v18 }
 0x24f   :  { %893 = vmatprep.subr.bf16.mxu0 %v2052_v19  ;;  %934 = vmatprep.subr.bf16.mxu1 %v2055_v20 }
 0x252   :  { %894 = vmatpush1.bf16.msra.mxu0 %v2059_v21  ;;  %935 = vmatpush1.bf16.msra.mxu1 %v2062_v22 }
 0x253   :  { %895 = vmatprep.subr.bf16.mxu0 %v2067_v23  ;;  %936 = vmatprep.subr.bf16.mxu1 %v2071_v24 }
 0x256   :  { %896 = vmatpush1.bf16.msra.mxu0 %v2074_v26  ;;  %937 = vmatpush1.bf16.msra.mxu1 %v2078_v27 }
 0x257   :  { %897 = vmatprep.subr.bf16.mxu0 %v2080_v28  ;;  %938 = vmatprep.subr.bf16.mxu1 %v2083_v29 }
 0x25a   :  { %898 = vmatpush1.bf16.msra.mxu0 %v2088_v30  ;;  %939 = vmatpush1.bf16.msra.mxu1 %v2090_v31 }
 0x25b   :  { %899 = vmatprep.subr.bf16.mxu0 %v2095_v32  ;;  %940 = vmatprep.subr.bf16.mxu1 %v2099_v33 }
 0x25e   :  { %900 = vmatpush1.bf16.msra.mxu0 %v2102_v35  ;;  %941 = vmatpush1.bf16.msra.mxu1 %v2106_v36 }
 0x25f   :  { %901 = vmatprep.subr.bf16.mxu0 %v2108_v37  ;;  %942 = vmatprep.subr.bf16.mxu1 %v2111_v38 }
 0x262   :  { %902 = vmatpush1.bf16.msra.mxu0 %v2116_v39  ;;  %943 = vmatpush1.bf16.msra.mxu1 %v2121_v40 }
 0x263   :  { %1005 = vmatprep.subr.bf16.mxu0 %v2015_v6  ;;  %1046 = vmatprep.subr.bf16.mxu1 %v2017_v7 }
 0x305   :  { %v803_v51 = vpop.f32.mrf.mxu0  ;;  %v844_v2 = vpop.f32.mrf.mxu1 }
 0x306   :  { %v851_v46 = vadd.f32 %v803_v51, %v2188_v4  ;;  %v853_v63 = vadd.f32 %v844_v2, %v2592_v0 }
 0x307   :  { %v805_v56 = vpop.f32.mrf.mxu0  ;;  %v846_v42 = vpop.f32.mrf.mxu1 }
 0x308   :  { %v1578_v5 = vmul.f32 -1.442695, %v851_v46  ;;  %v852_v44 = vadd.f32 %v805_v56, %v2193_v34  ;;  %v854_v59 = vadd.f32 %v846_v42, %v2196_v41 }
 0x309   :  { %v807_v62 = vpop.f32.mrf.mxu0  ;;  %v848_v57 = vpop.f32.mrf.mxu1 }
 0x30a   :  { %1698 = vpow2.f32 %v1578_v5  ;;  %v1579_v43 = vmul.f32 -1.442695, %v852_v44  ;;  %v1580_v49 = vmul.f32 -1.442695, %v854_v59  ;;  %v2593_v5 = vld [vmem:[#allocation20_spill] sm:$0xff] }
 0x30b   :  { %v808_v53 = vpop.f32.mrf.mxu0  ;;  %v849_v55 = vpop.f32.mrf.mxu1 }
 0x30c   :  { %1700 = vpow2.f32 %v1579_v43  ;;  %v2594_v53 = vld [vmem:[#allocation22_spill] sm:$0xff] }
 0x30d   :  { %1702 = vtanh.f32 %v853_v63 }
 0x30e   :  { %1704 = vpow2.f32 %v1580_v49 }
 0x317   :  { %v1699_v50 = vpop.eup %1698 }
 0x318   :  { %v858_v47 = vadd.f32 1.0, %v1699_v50 }
 0x319   :  { %v1701_v4 = vpop.eup %1700 }
 0x31a   :  { %1706 = vrcp.f32 %v858_v47  ;;  %v864_v48 = vadd.f32 1.0, %v1701_v4  ;;  %v1703_v34 = vpop.eup %1702  ;;  %v2595_v47 = vld [vmem:[#allocation23_spill] sm:$0xff]  ;;  %v2596_v4 = vld [vmem:[#allocation21_spill] sm:$0xff] }
 0x31b   :  { %v1705_v61 = vpop.eup %1704 }
 0x31c   :  { %1708 = vrcp.f32 %v864_v48  ;;  %v871_v58 = vadd.f32 1.0, %v1705_v61 }
 0x31e   :  { %1710 = vrcp.f32 %v871_v58 }
 0x327   :  { %v1707_v52 = vpop.eup %1706 }
 0x328   :  { %v875_v60 = vmul.f32 %v1707_v52, %v1703_v34 }
 0x329   :  { %v1709_v54 = vpop.eup %1708 }
 0x32a   :  { %v874_v25 = vmul.f32 %v1709_v54, %v2296_v1 }
 0x32b   :  { %v1711_v51 = vpop.eup %1710 }
 0x32c   :  { %v2338_v41 = vadd.f32 %v875_v60, %v874_v25 }
 0x32e   :  { %1712 = vtanh.f32 %v2338_v41 }
 0x33b   :  { %v1713_v2 = vpop.eup %1712 }
 0x33c   :  { %v878_v46 = vmul.f32 %v1713_v2, %v1711_v51 }
 0x33e   :  { %v879_v56 = vpack.c.bf16 %v878_v46, %v878_v46 }
 0x340   :  { %881 = vst [vmem:[#allocation11 + $0x8] sm:$0xf] %v879_v56  ;;  %920 = vmatmul.mubr.bf16.vlgmr.msra.gmra.mxu0 %v879_v56  ;;  %961 = vmatmul.mubr.bf16.vlgmr.msra.gmra.mxu1 %v879_v56 }
 0x341   :  { %1006 = vmatpush1.bf16.msra.mxu0 %v2019_v8  ;;  %1047 = vmatpush1.bf16.msra.mxu1 %v2022_v9 }
 0x342   :  { %1007 = vmatprep.subr.bf16.mxu0 %v2026_v10  ;;  %1048 = vmatprep.subr.bf16.mxu1 %v2030_v11 }
 0x343   :  { %1037 = vmatprep.mubr.bf16.mxu0 %v2591_v45  ;;  %1078 = vmatprep.mubr.bf16.mxu1 %v2591_v45 }
 0x345   :  { %1008 = vmatpush1.bf16.msra.mxu0 %v2032_v12  ;;  %1049 = vmatpush1.bf16.msra.mxu1 %v2034_v13 }
 0x346   :  { %1009 = vmatprep.subr.bf16.mxu0 %v2040_v15  ;;  %1050 = vmatprep.subr.bf16.mxu1 %v2043_v16 }
 0x349   :  { %1010 = vmatpush1.bf16.msra.mxu0 %v2046_v17  ;;  %1051 = vmatpush1.bf16.msra.mxu1 %v2048_v18 }
 0x34a   :  { %1011 = vmatprep.subr.bf16.mxu0 %v2052_v19  ;;  %1052 = vmatprep.subr.bf16.mxu1 %v2055_v20 }
 0x34d   :  { %1012 = vmatpush1.bf16.msra.mxu0 %v2059_v21  ;;  %1053 = vmatpush1.bf16.msra.mxu1 %v2062_v22 }
 0x34e   :  { %1013 = vmatprep.subr.bf16.mxu0 %v2067_v23  ;;  %1054 = vmatprep.subr.bf16.mxu1 %v2071_v24 }
 0x351   :  { %1014 = vmatpush1.bf16.msra.mxu0 %v2074_v26  ;;  %1055 = vmatpush1.bf16.msra.mxu1 %v2078_v27 }
 0x352   :  { %1015 = vmatprep.subr.bf16.mxu0 %v2080_v28  ;;  %1056 = vmatprep.subr.bf16.mxu1 %v2083_v29 }
 0x355   :  { %1016 = vmatpush1.bf16.msra.mxu0 %v2088_v30  ;;  %1057 = vmatpush1.bf16.msra.mxu1 %v2090_v31 }
 0x356   :  { %1017 = vmatprep.subr.bf16.mxu0 %v2095_v32  ;;  %1058 = vmatprep.subr.bf16.mxu1 %v2099_v33 }
 0x359   :  { %1018 = vmatpush1.bf16.msra.mxu0 %v2102_v35  ;;  %1059 = vmatpush1.bf16.msra.mxu1 %v2106_v36 }
 0x35a   :  { %1019 = vmatprep.subr.bf16.mxu0 %v2108_v37  ;;  %1060 = vmatprep.subr.bf16.mxu1 %v2111_v38 }
 0x35d   :  { %1020 = vmatpush1.bf16.msra.mxu0 %v2116_v39  ;;  %1061 = vmatpush1.bf16.msra.mxu1 %v2121_v40 }
 0x35e   :  { %1123 = vmatprep.subr.bf16.mxu0 %v2015_v6  ;;  %1164 = vmatprep.subr.bf16.mxu1 %v2017_v7 }
 0x400   :  { %v921_v1 = vpop.f32.mrf.mxu0  ;;  %v962_v42 = vpop.f32.mrf.mxu1 }
 0x401   :  { %v969_v44 = vadd.f32 %v921_v1, %v2593_v5  ;;  %v971_v7 = vadd.f32 %v962_v42, %v2596_v4 }
 0x402   :  { %v923_v62 = vpop.f32.mrf.mxu0  ;;  %v964_v57 = vpop.f32.mrf.mxu1 }
 0x403   :  { %v1581_v43 = vmul.f32 -1.442695, %v969_v44  ;;  %v970_v55 = vadd.f32 %v923_v62, %v2594_v53  ;;  %v972_v6 = vadd.f32 %v964_v57, %v2595_v47 }
 0x404   :  { %v925_v59 = vpop.f32.mrf.mxu0  ;;  %v966_v0 = vpop.f32.mrf.mxu1 }
 0x405   :  { %1714 = vpow2.f32 %v1581_v43  ;;  %v1582_v63 = vmul.f32 -1.442695, %v970_v55  ;;  %v1583_v48 = vmul.f32 -1.442695, %v972_v6 }
 0x406   :  { %v926_v49 = vpop.f32.mrf.mxu0  ;;  %v967_v50 = vpop.f32.mrf.mxu1 }
 0x407   :  { %1716 = vpow2.f32 %v1582_v63 }
 0x408   :  { %1718 = vtanh.f32 %v971_v7 }
 0x409   :  { %1720 = vpow2.f32 %v1583_v48  ;;  %v2429_v48 = vld [vmem:[#allocation10 + $0xe0] ss:$16 sps:$4 sm:$0xff]  }
 0x412   :  { %v1715_v34 = vpop.eup %1714 }
 0x413   :  { %v976_v61 = vadd.f32 1.0, %v1715_v34  ;;  %v2432_v34 = vld [vmem:[#allocation10 + $0xe8] ss:$16 sps:$4 sm:$0xff]  }
 0x414   :  { %v1717_v52 = vpop.eup %1716 }
 0x415   :  { %1722 = vrcp.f32 %v976_v61  ;;  %v982_v60 = vadd.f32 1.0, %v1717_v52  ;;  %v1719_v54 = vpop.eup %1718  ;;  %v2435_v61 = vld [vmem:[#allocation10 + $0xc4] ss:$16 sps:$4 sm:$0xff]   ;;  %v2438_v52 = vld [vmem:[#allocation10 + $0xcc] ss:$16 sps:$4 sm:$0xff]  }
 0x416   :  { %v1721_v58 = vpop.eup %1720 }
 0x417   :  { %1724 = vrcp.f32 %v982_v60  ;;  %v989_v46 = vadd.f32 1.0, %v1721_v58  ;;  %v2443_v60 = vld [vmem:[#allocation10 + $0xc0] ss:$16 sps:$4 sm:$0xff]   ;;  %v2449_v58 = vld [vmem:[#allocation10 + $0xa4] ss:$16 sps:$4 sm:$0xff]  }
 0x419   :  { %1726 = vrcp.f32 %v989_v46  ;;  %v2461_v46 = vld [vmem:[#allocation10 + $0x84] ss:$16 sps:$4 sm:$0xff]  }
 0x422   :  { %v1723_v25 = vpop.eup %1722 }
 0x423   :  { %v993_v51 = vmul.f32 %v1723_v25, %v1719_v54  ;;  %v2446_v54 = vld [vmem:[#allocation10 + $0xc8] ss:$16 sps:$4 sm:$0xff]   ;;  %v2452_v25 = vld [vmem:[#allocation10 + $0xac] ss:$16 sps:$4 sm:$0xff]  }
 0x424   :  { %v1725_v2 = vpop.eup %1724 }
 0x425   :  { %v992_v56 = vmul.f32 %v1725_v2, %v2338_v41  ;;  %v2458_v2 = vld [vmem:[#allocation10 + $0xa8] ss:$16 sps:$4 sm:$0xff]  }
 0x426   :  { %v1727_v42 = vpop.eup %1726 }
 0x427   :  { %v2380_v1 = vadd.f32 %v993_v51, %v992_v56  ;;  %v2455_v51 = vld [vmem:[#allocation10 + $0xa0] ss:$16 sps:$4 sm:$0xff]   ;;  %v2464_v56 = vld [vmem:[#allocation10 + $0x8c] ss:$16 sps:$4 sm:$0xff]  }
 0x429   :  { %1728 = vtanh.f32 %v2380_v1 }
 0x436   :  { %v1729_v5 = vpop.eup %1728 }
 0x437   :  { %v996_v44 = vmul.f32 %v1729_v5, %v1727_v42  ;;  %v2470_v42 = vld [vmem:[#allocation10 + $0x88] ss:$16 sps:$4 sm:$0xff]   ;;  %v2473_v5 = vld [vmem:[#allocation10 + $0x64] ss:$16 sps:$4 sm:$0xff]  }
 0x439   :  { %v997_v62 = vpack.c.bf16 %v996_v44, %v996_v44  ;;  %v2476_v44 = vld [vmem:[#allocation10 + $0x6c] ss:$16 sps:$4 sm:$0xff]  }
 0x43b   :  { %999 = vst [vmem:[#allocation11 + $0xc] sm:$0xf] %v997_v62  ;;  %1038 = vmatmul.mubr.bf16.vlgmr.msra.gmra.mxu0 %v997_v62  ;;  %1079 = vmatmul.mubr.bf16.vlgmr.msra.gmra.mxu1 %v997_v62  ;;  %v2479_v62 = vld [vmem:[#allocation10 + $0x60] ss:$16 sps:$4 sm:$0xff]  }
 0x43c   :  { %1124 = vmatpush1.bf16.msra.mxu0 %v2019_v8  ;;  %1165 = vmatpush1.bf16.msra.mxu1 %v2022_v9  ;;  %v2415_v8 = vld [vmem:[#allocation10 + $0xe4] ss:$16 sps:$4 sm:$0xff]   ;;  %v2418_v9 = vld [vmem:[#allocation10 + $0xec] ss:$16 sps:$4 sm:$0xff]  }
 0x43d   :  { %1125 = vmatprep.subr.bf16.mxu0 %v2026_v10  ;;  %1166 = vmatprep.subr.bf16.mxu1 %v2030_v11 }
 0x43e   :  { %1155 = vmatprep.mubr.bf16.mxu0 %v2591_v45  ;;  %1196 = vmatprep.mubr.bf16.mxu1 %v2591_v45 }
 0x440   :  { %1126 = vmatpush1.bf16.msra.mxu0 %v2032_v12  ;;  %1167 = vmatpush1.bf16.msra.mxu1 %v2034_v13  ;;  %v2597_v12 = vld [vmem:[#allocation24_spill] sm:$0xff] }
 0x441   :  { %1127 = vmatprep.subr.bf16.mxu0 %v2040_v15  ;;  %1168 = vmatprep.subr.bf16.mxu1 %v2043_v16 }
 0x444   :  { %1128 = vmatpush1.bf16.msra.mxu0 %v2046_v17  ;;  %1169 = vmatpush1.bf16.msra.mxu1 %v2048_v18  ;;  %v2598_v18 = vld [vmem:[#allocation26_spill] sm:$0xff] }
 0x445   :  { %1129 = vmatprep.subr.bf16.mxu0 %v2052_v19  ;;  %1170 = vmatprep.subr.bf16.mxu1 %v2055_v20 }
 0x448   :  { %1130 = vmatpush1.bf16.msra.mxu0 %v2059_v21  ;;  %1171 = vmatpush1.bf16.msra.mxu1 %v2062_v22 }
 0x449   :  { %1131 = vmatprep.subr.bf16.mxu0 %v2067_v23  ;;  %1172 = vmatprep.subr.bf16.mxu1 %v2071_v24 }
 0x44c   :  { %1132 = vmatpush1.bf16.msra.mxu0 %v2074_v26  ;;  %1173 = vmatpush1.bf16.msra.mxu1 %v2078_v27  ;;  %v2599_v26 = vld [vmem:[#allocation27_spill] sm:$0xff] }
 0x44d   :  { %1133 = vmatprep.subr.bf16.mxu0 %v2080_v28  ;;  %1174 = vmatprep.subr.bf16.mxu1 %v2083_v29  ;;  %v2600_v28 = vld [vmem:[#allocation25_spill] sm:$0xff] }
 0x450   :  { %1134 = vmatpush1.bf16.msra.mxu0 %v2088_v30  ;;  %1175 = vmatpush1.bf16.msra.mxu1 %v2090_v31 }
 0x451   :  { %1135 = vmatprep.subr.bf16.mxu0 %v2095_v32  ;;  %1176 = vmatprep.subr.bf16.mxu1 %v2099_v33 }
 0x454   :  { %1136 = vmatpush1.bf16.msra.mxu0 %v2102_v35  ;;  %1177 = vmatpush1.bf16.msra.mxu1 %v2106_v36 }
 0x455   :  { %1137 = vmatprep.subr.bf16.mxu0 %v2108_v37  ;;  %1178 = vmatprep.subr.bf16.mxu1 %v2111_v38 }
 0x458   :  { %1138 = vmatpush1.bf16.msra.mxu0 %v2116_v39  ;;  %1179 = vmatpush1.bf16.msra.mxu1 %v2121_v40 }
 0x459   :  { %1241 = vmatprep.subr.bf16.mxu0 %v2415_v8  ;;  %1282 = vmatprep.subr.bf16.mxu1 %v2418_v9 }
 0x4fb   :  { %v1039_v10 = vpop.f32.mrf.mxu0  ;;  %v1080_v11 = vpop.f32.mrf.mxu1 }
 0x4fc   :  { %v1087_v13 = vadd.f32 %v1039_v10, %v2597_v12  ;;  %v1089_v29 = vadd.f32 %v1080_v11, %v2600_v28  ;;  %v2482_v10 = vld [vmem:[#allocation10 + $0x68] ss:$16 sps:$4 sm:$0xff]   ;;  %v2485_v11 = vld [vmem:[#allocation10 + $0x44] ss:$16 sps:$4 sm:$0xff]   ;;  %v2488_v12 = vld [vmem:[#allocation10 + $0x4c] ss:$16 sps:$4 sm:$0xff]  }
 0x4fd   :  { %v1041_v15 = vpop.f32.mrf.mxu0  ;;  %v1082_v16 = vpop.f32.mrf.mxu1 }
 0x4fe   :  { %v1584_v17 = vmul.f32 -1.442695, %v1087_v13  ;;  %v1088_v19 = vadd.f32 %v1041_v15, %v2598_v18  ;;  %v1090_v27 = vadd.f32 %v1082_v16, %v2599_v26  ;;  %v2491_v13 = vld [vmem:[#allocation10 + $0x40] ss:$16 sps:$4 sm:$0xff]   ;;  %v2494_v15 = vld [vmem:[#allocation10 + $0x48] ss:$16 sps:$4 sm:$0xff]  }
 0x4ff   :  { %v1043_v20 = vpop.f32.mrf.mxu0  ;;  %v1084_v21 = vpop.f32.mrf.mxu1  ;;  %v2497_v16 = vld [vmem:[#allocation10 + $0x24] ss:$16 sps:$4 sm:$0xff]  }
 0x500   :  { %1730 = vpow2.f32 %v1584_v17  ;;  %v1585_v22 = vmul.f32 -1.442695, %v1088_v19  ;;  %v1586_v30 = vmul.f32 -1.442695, %v1090_v27  ;;  %v2601_v19 = vld [vmem:[#allocation28_spill] sm:$0xff]  ;;  %v2604_v26 = vld [vmem:[#allocation29_spill] sm:$0xff] }
 0x501   :  { %v1044_v23 = vpop.f32.mrf.mxu0  ;;  %v1085_v24 = vpop.f32.mrf.mxu1 }
 0x502   :  { %1732 = vpow2.f32 %v1585_v22 }
 0x503   :  { %1734 = vtanh.f32 %v1089_v29 }
 0x504   :  { %1736 = vpow2.f32 %v1586_v30 }
 0x50d   :  { %v1731_v31 = vpop.eup %1730 }
 0x50e   :  { %v1094_v32 = vadd.f32 1.0, %v1731_v31 }
 0x50f   :  { %v1733_v41 = vpop.eup %1732 }
 0x510   :  { %1738 = vrcp.f32 %v1094_v32  ;;  %v1100_v57 = vadd.f32 1.0, %v1733_v41  ;;  %v1735_v43 = vpop.eup %1734 }
 0x511   :  { %v1737_v53 = vpop.eup %1736 }
 0x512   :  { %1740 = vrcp.f32 %v1100_v57  ;;  %v1107_v63 = vadd.f32 1.0, %v1737_v53 }
 0x514   :  { %1742 = vrcp.f32 %v1107_v63 }
 0x51d   :  { %v1739_v55 = vpop.eup %1738 }
 0x51e   :  { %v1111_v59 = vmul.f32 %v1739_v55, %v1735_v43 }
 0x51f   :  { %v1741_v0 = vpop.eup %1740 }
 0x520   :  { %v1110_v49 = vmul.f32 %v1741_v0, %v2380_v1  ;;  %v2467_v1 = vld [vmem:[#allocation10 + $0x80] ss:$16 sps:$4 sm:$0xff]  }
 0x521   :  { %v1743_v47 = vpop.eup %1742 }
 0x522   :  { %v2426_v50 = vadd.f32 %v1111_v59, %v1110_v49 }
 0x524   :  { %1744 = vtanh.f32 %v2426_v50 }
 0x531   :  { %v1745_v6 = vpop.eup %1744 }
 0x532   :  { %v1114_v4 = vmul.f32 %v1745_v6, %v1743_v47 }
 0x534   :  { %v1115_v7 = vpack.c.bf16 %v1114_v4, %v1114_v4  ;;  %v1821_v4 = vld [vmem:[#allocation10 + $0x28] ss:$16 sps:$4 sm:$0xff]  }
 0x536   :  { %1117 = vst [vmem:[#allocation11 + $0x10] sm:$0xf] %v1115_v7  ;;  %1156 = vmatmul.mubr.bf16.vlgmr.msra.gmra.mxu0 %v1115_v7  ;;  %1197 = vmatmul.mubr.bf16.vlgmr.msra.gmra.mxu1 %v1115_v7  ;;  %v1822_v7 = vld [vmem:[#allocation10 + $0x4] ss:$16 sps:$4 sm:$0xff]  }
 0x537   :  { %1242 = vmatpush1.bf16.msra.mxu0 %v2429_v48  ;;  %1283 = vmatpush1.bf16.msra.mxu1 %v2432_v34 }
 0x538   :  { %1243 = vmatprep.subr.bf16.mxu0 %v2435_v61  ;;  %1284 = vmatprep.subr.bf16.mxu1 %v2438_v52 }
 0x539   :  { %1273 = vmatprep.mubr.bf16.mxu0 %v2591_v45  ;;  %1314 = vmatprep.mubr.bf16.mxu1 %v2591_v45 }
 0x53b   :  { %1244 = vmatpush1.bf16.msra.mxu0 %v2443_v60  ;;  %1285 = vmatpush1.bf16.msra.mxu1 %v2446_v54 }
 0x53c   :  { %1245 = vmatprep.subr.bf16.mxu0 %v2449_v58  ;;  %1286 = vmatprep.subr.bf16.mxu1 %v2452_v25 }
 0x53f   :  { %1246 = vmatpush1.bf16.msra.mxu0 %v2455_v51  ;;  %1287 = vmatpush1.bf16.msra.mxu1 %v2458_v2 }
 0x540   :  { %1247 = vmatprep.subr.bf16.mxu0 %v2461_v46  ;;  %1288 = vmatprep.subr.bf16.mxu1 %v2464_v56 }
 0x543   :  { %1248 = vmatpush1.bf16.msra.mxu0 %v2467_v1  ;;  %1289 = vmatpush1.bf16.msra.mxu1 %v2470_v42 }
 0x544   :  { %1249 = vmatprep.subr.bf16.mxu0 %v2473_v5  ;;  %1290 = vmatprep.subr.bf16.mxu1 %v2476_v44 }
 0x547   :  { %1250 = vmatpush1.bf16.msra.mxu0 %v2479_v62  ;;  %1291 = vmatpush1.bf16.msra.mxu1 %v2482_v10 }
 0x548   :  { %1251 = vmatprep.subr.bf16.mxu0 %v2485_v11  ;;  %1292 = vmatprep.subr.bf16.mxu1 %v2488_v12 }
 0x54b   :  { %1252 = vmatpush1.bf16.msra.mxu0 %v2491_v13  ;;  %1293 = vmatpush1.bf16.msra.mxu1 %v2494_v15 }
 0x54c   :  { %1253 = vmatprep.subr.bf16.mxu0 %v2497_v16  ;;  %1294 = vmatprep.subr.bf16.mxu1 %v2099_v33 }
 0x54f   :  { %1254 = vmatpush1.bf16.msra.mxu0 %v2102_v35  ;;  %1295 = vmatpush1.bf16.msra.mxu1 %v2106_v36  ;;  %v2602_v36 = vld [vmem:[#allocation30_spill] sm:$0xff] }
 0x550   :  { %1255 = vmatprep.subr.bf16.mxu0 %v2108_v37  ;;  %1296 = vmatprep.subr.bf16.mxu1 %v2111_v38 }
 0x553   :  { %1256 = vmatpush1.bf16.msra.mxu0 %v2116_v39  ;;  %1297 = vmatpush1.bf16.msra.mxu1 %v2121_v40  ;;  %v2603_v40 = vld [vmem:[#allocation31_spill] sm:$0xff] }
 0x554   :  { %1359 = vmatprep.subr.bf16.mxu0 %v2415_v8  ;;  %1400 = vmatprep.subr.bf16.mxu1 %v2418_v9 }
 0x5f6   :  { %v1157_v17 = vpop.f32.mrf.mxu0  ;;  %v1198_v18 = vpop.f32.mrf.mxu1 }
 0x5f7   :  { %v1205_v33 = vadd.f32 %v1157_v17, %v2601_v19  ;;  %v1207_v9 = vadd.f32 %v1198_v18, %v2604_v26 }
 0x5f8   :  { %v1159_v20 = vpop.f32.mrf.mxu0  ;;  %v1200_v35 = vpop.f32.mrf.mxu1 }
 0x5f9   :  { %v1587_v21 = vmul.f32 -1.442695, %v1205_v33  ;;  %v1206_v22 = vadd.f32 %v1159_v20, %v2602_v36  ;;  %v1208_v8 = vadd.f32 %v1200_v35, %v2603_v40 }
 0x5fa   :  { %v1161_v37 = vpop.f32.mrf.mxu0  ;;  %v1202_v23 = vpop.f32.mrf.mxu1 }
 0x5fb   :  { %1746 = vpow2.f32 %v1587_v21  ;;  %v1588_v38 = vmul.f32 -1.442695, %v1206_v22  ;;  %v1589_v27 = vmul.f32 -1.442695, %v1208_v8 }
 0x5fc   :  { %v1162_v39 = vpop.f32.mrf.mxu0  ;;  %v1203_v24 = vpop.f32.mrf.mxu1 }
 0x5fd   :  { %1748 = vpow2.f32 %v1588_v38 }
 0x5fe   :  { %1750 = vtanh.f32 %v1207_v9  ;;  %v2609_v9 = vld [vmem:[#allocation36_spill] sm:$0xff] }
 0x5ff   :  { %1752 = vpow2.f32 %v1589_v27 }
 0x608   :  { %v1747_v28 = vpop.eup %1746 }
 0x609   :  { %v1212_v29 = vadd.f32 1.0, %v1747_v28 }
 0x60a   :  { %v1749_v30 = vpop.eup %1748 }
 0x60b   :  { %1754 = vrcp.f32 %v1212_v29  ;;  %v1218_v31 = vadd.f32 1.0, %v1749_v30  ;;  %v1751_v32 = vpop.eup %1750 }
 0x60c   :  { %v1753_v41 = vpop.eup %1752 }
 0x60d   :  { %1756 = vrcp.f32 %v1218_v31  ;;  %v1225_v55 = vadd.f32 1.0, %v1753_v41 }
 0x60f   :  { %1758 = vrcp.f32 %v1225_v55 }
 0x618   :  { %v1755_v57 = vpop.eup %1754 }
 0x619   :  { %v1229_v43 = vmul.f32 %v1755_v57, %v1751_v32 }
 0x61a   :  { %v1757_v53 = vpop.eup %1756 }
 0x61b   :  { %v1228_v59 = vmul.f32 %v1757_v53, %v2426_v50  ;;  %v1820_v50 = vld [vmem:[#allocation10 + $0x20] ss:$16 sps:$4 sm:$0xff]  }
 0x61c   :  { %v1759_v63 = vpop.eup %1758 }
 0x61d   :  { %v2514_v0 = vadd.f32 %v1229_v43, %v1228_v59  ;;  %v2610_v59 = vld [vmem:[#allocation37_spill] sm:$0xff] }
 0x61f   :  { %1760 = vtanh.f32 %v2514_v0 }
 0x62c   :  { %v1761_v49 = vpop.eup %1760 }
 0x62d   :  { %v1232_v47 = vmul.f32 %v1761_v49, %v1759_v63 }
 0x62f   :  { %v1233_v6 = vpack.c.bf16 %v1232_v47, %v1232_v47 }
 0x631   :  { %1235 = vst [vmem:[#allocation11 + $0x14] sm:$0xf] %v1233_v6  ;;  %1274 = vmatmul.mubr.bf16.vlgmr.msra.gmra.mxu0 %v1233_v6  ;;  %1315 = vmatmul.mubr.bf16.vlgmr.msra.gmra.mxu1 %v1233_v6 }
 0x632   :  { %1360 = vmatpush1.bf16.msra.mxu0 %v2429_v48  ;;  %1401 = vmatpush1.bf16.msra.mxu1 %v2432_v34  ;;  %v1823_v48 = vld [vmem:[#allocation10 + $0xc] ss:$16 sps:$4 sm:$0xff]   ;;  %v1824_v34 = vld [vmem:[#allocation10] ss:$16 sps:$4 sm:$0xff]  }
 0x633   :  { %1361 = vmatprep.subr.bf16.mxu0 %v2435_v61  ;;  %1402 = vmatprep.subr.bf16.mxu1 %v2438_v52  ;;  %v1825_v61 = vld [vmem:[#allocation10 + $0x8] ss:$16 sps:$4 sm:$0xff]  }
 0x634   :  { %1391 = vmatprep.mubr.bf16.mxu0 %v2591_v45  ;;  %1432 = vmatprep.mubr.bf16.mxu1 %v2591_v45  ;;  %v1819_v45 = vld [vmem:[#allocation10 + $0x2c] ss:$16 sps:$4 sm:$0xff]  }
 0x636   :  { %1362 = vmatpush1.bf16.msra.mxu0 %v2443_v60  ;;  %1403 = vmatpush1.bf16.msra.mxu1 %v2446_v54  ;;  %v2605_v54 = vld [vmem:[#allocation32_spill] sm:$0xff] }
 0x637   :  { %1363 = vmatprep.subr.bf16.mxu0 %v2449_v58  ;;  %1404 = vmatprep.subr.bf16.mxu1 %v2452_v25 }
 0x63a   :  { %1364 = vmatpush1.bf16.msra.mxu0 %v2455_v51  ;;  %1405 = vmatpush1.bf16.msra.mxu1 %v2458_v2 }
 0x63b   :  { %1365 = vmatprep.subr.bf16.mxu0 %v2461_v46  ;;  %1406 = vmatprep.subr.bf16.mxu1 %v2464_v56  ;;  %v2606_v46 = vld [vmem:[#allocation34_spill] sm:$0xff] }
 0x63e   :  { %1366 = vmatpush1.bf16.msra.mxu0 %v2467_v1  ;;  %1407 = vmatpush1.bf16.msra.mxu1 %v2470_v42 }
 0x63f   :  { %1367 = vmatprep.subr.bf16.mxu0 %v2473_v5  ;;  %1408 = vmatprep.subr.bf16.mxu1 %v2476_v44 }
 0x642   :  { %1368 = vmatpush1.bf16.msra.mxu0 %v2479_v62  ;;  %1409 = vmatpush1.bf16.msra.mxu1 %v2482_v10  ;;  %v2607_v10 = vld [vmem:[#allocation35_spill] sm:$0xff] }
 0x643   :  { %1369 = vmatprep.subr.bf16.mxu0 %v2485_v11  ;;  %1410 = vmatprep.subr.bf16.mxu1 %v2488_v12  ;;  %v2608_v12 = vld [vmem:[#allocation33_spill] sm:$0xff] }
 0x646   :  { %1370 = vmatpush1.bf16.msra.mxu0 %v2491_v13  ;;  %1411 = vmatpush1.bf16.msra.mxu1 %v2494_v15 }
 0x647   :  { %1371 = vmatprep.subr.bf16.mxu0 %v2497_v16  ;;  %1412 = vmatprep.subr.bf16.mxu1 %v1819_v45 }
 0x64a   :  { %1372 = vmatpush1.bf16.msra.mxu0 %v1820_v50  ;;  %1413 = vmatpush1.bf16.msra.mxu1 %v1821_v4 }
 0x64b   :  { %1373 = vmatprep.subr.bf16.mxu0 %v1822_v7  ;;  %1414 = vmatprep.subr.bf16.mxu1 %v1823_v48 }
 0x64e   :  { %1374 = vmatpush1.bf16.msra.mxu0 %v1824_v34  ;;  %1415 = vmatpush1.bf16.msra.mxu1 %v1825_v61 }
 0x6f1   :  { %v1275_v52 = vpop.f32.mrf.mxu0  ;;  %v1316_v60 = vpop.f32.mrf.mxu1 }
 0x6f2   :  { %v1323_v58 = vadd.f32 %v1275_v52, %v2605_v54  ;;  %v1325_v13 = vadd.f32 %v1316_v60, %v2608_v12 }
 0x6f3   :  { %v1277_v25 = vpop.f32.mrf.mxu0  ;;  %v1318_v51 = vpop.f32.mrf.mxu1 }
 0x6f4   :  { %v1590_v2 = vmul.f32 -1.442695, %v1323_v58  ;;  %v1324_v56 = vadd.f32 %v1277_v25, %v2606_v46  ;;  %v1326_v11 = vadd.f32 %v1318_v51, %v2607_v10 }
 0x6f5   :  { %v1279_v1 = vpop.f32.mrf.mxu0  ;;  %v1320_v42 = vpop.f32.mrf.mxu1 }
 0x6f6   :  { %1762 = vpow2.f32 %v1590_v2  ;;  %v1591_v5 = vmul.f32 -1.442695, %v1324_v56  ;;  %v1592_v15 = vmul.f32 -1.442695, %v1326_v11 }
 0x6f7   :  { %v1280_v44 = vpop.f32.mrf.mxu0  ;;  %v1321_v62 = vpop.f32.mrf.mxu1 }
 0x6f8   :  { %1764 = vpow2.f32 %v1591_v5 }
 0x6f9   :  { %1766 = vtanh.f32 %v1325_v13 }
 0x6fa   :  { %1768 = vpow2.f32 %v1592_v15 }
 0x703   :  { %v1763_v16 = vpop.eup %1762 }
 0x704   :  { %v1330_v17 = vadd.f32 1.0, %v1763_v16 }
 0x705   :  { %v1765_v18 = vpop.eup %1764 }
 0x706   :  { %1770 = vrcp.f32 %v1330_v17  ;;  %v1336_v19 = vadd.f32 1.0, %v1765_v18  ;;  %v1767_v33 = vpop.eup %1766 }
 0x707   :  { %v1769_v20 = vpop.eup %1768 }
 0x708   :  { %1772 = vrcp.f32 %v1336_v19  ;;  %v1343_v22 = vadd.f32 1.0, %v1769_v20 }
 0x70a   :  { %1774 = vrcp.f32 %v1343_v22 }
 0x713   :  { %v1771_v35 = vpop.eup %1770 }
 0x714   :  { %v1347_v21 = vmul.f32 %v1771_v35, %v1767_v33 }
 0x715   :  { %v1773_v36 = vpop.eup %1772 }
 0x716   :  { %v1346_v37 = vmul.f32 %v1773_v36, %v2514_v0 }
 0x717   :  { %v1775_v38 = vpop.eup %1774 }
 0x718   :  { %v1348_v23 = vadd.f32 %v1347_v21, %v1346_v37 }
 0x71a   :  { %1776 = vtanh.f32 %v1348_v23 }
 0x727   :  { %v1777_v39 = vpop.eup %1776 }
 0x728   :  { %v1350_v24 = vmul.f32 %v1777_v39, %v1775_v38 }
 0x72a   :  { %v1351_v40 = vpack.c.bf16 %v1350_v24, %v1350_v24 }
 0x72c   :  { %1353 = vst [vmem:[#allocation11 + $0x18] sm:$0xf] %v1351_v40  ;;  %1392 = vmatmul.mubr.bf16.vlgmr.msra.gmra.mxu0 %v1351_v40  ;;  %1433 = vmatmul.mubr.bf16.vlgmr.msra.gmra.mxu1 %v1351_v40 }
 0x7ec   :  { %v1393_v8 = vpop.f32.mrf.mxu0  ;;  %v1434_v26 = vpop.f32.mrf.mxu1 }
 0x7ed   :  { %v1441_v27 = vadd.f32 %v1393_v8, %v2609_v9  ;;  %v1443_v0 = vadd.f32 %v1434_v26, %v2610_v59 }
 0x7ee   :  { %v1395_v28 = vpop.f32.mrf.mxu0  ;;  %v1436_v29 = vpop.f32.mrf.mxu1 }
 0x7ef   :  { %v1593_v30 = vmul.f32 -1.442695, %v1441_v27  ;;  %v1442_v31 = vadd.f32 %v1395_v28, %v2244_v3  ;;  %v1444_v55 = vadd.f32 %v1436_v29, %v2247_v14 }
 0x7f0   :  { %v1397_v32 = vpop.f32.mrf.mxu0  ;;  %v1438_v41 = vpop.f32.mrf.mxu1 }
 0x7f1   :  { %1778 = vpow2.f32 %v1593_v30  ;;  %v1594_v57 = vmul.f32 -1.442695, %v1442_v31  ;;  %v1595_v63 = vmul.f32 -1.442695, %v1444_v55 }
 0x7f2   :  { %v1398_v43 = vpop.f32.mrf.mxu0  ;;  %v1439_v53 = vpop.f32.mrf.mxu1 }
 0x7f3   :  { %1780 = vpow2.f32 %v1594_v57 }
 0x7f4   :  { %1782 = vtanh.f32 %v1443_v0 }
 0x7f5   :  { %1784 = vpow2.f32 %v1595_v63 }
 0x7fe   :  { %v1779_v49 = vpop.eup %1778 }
 0x7ff   :  { %v1448_v47 = vadd.f32 1.0, %v1779_v49 }
 0x800   :  { %v1781_v6 = vpop.eup %1780 }
 0x801   :  { %1786 = vrcp.f32 %v1448_v47  ;;  %v1454_v45 = vadd.f32 1.0, %v1781_v6  ;;  %v1783_v3 = vpop.eup %1782 }
 0x802   :  { %v1785_v50 = vpop.eup %1784 }
 0x803   :  { %1788 = vrcp.f32 %v1454_v45  ;;  %v1461_v34 = vadd.f32 1.0, %v1785_v50 }
 0x805   :  { %1790 = vrcp.f32 %v1461_v34 }
 0x80e   :  { %v1787_v4 = vpop.eup %1786 }
 0x80f   :  { %v1465_v7 = vmul.f32 %v1787_v4, %v1783_v3 }
 0x810   :  { %v1789_v48 = vpop.eup %1788 }
 0x811   :  { %v1464_v61 = vmul.f32 %v1789_v48, %v1348_v23 }
 0x812   :  { %v1791_v14 = vpop.eup %1790 }
 0x813   :  { %v1466_v52 = vadd.f32 %v1465_v7, %v1464_v61 }
 0x815   :  { %1792 = vtanh.f32 %v1466_v52  ;;  %1478 = vst [vmem:[#allocation14] sm:$0xff] %v1466_v52 }
 0x822   :  { %v1793_v60 = vpop.eup %1792 }
 0x823   :  { %v1468_v54 = vmul.f32 %v1793_v60, %v1791_v14 }
 0x825   :  { %v1469_v58 = vpack.c.bf16 %v1468_v54, %v1468_v54  ;;  %1477 = vst [vmem:[#allocation12] sm:$0xff] %v1468_v54 }
 0x826   :  { %1897 = shalt.err (!%p1894_p5)
}
 0x827   :  { %1500 = dma.vmem_to_hbm [thread:$0]  %s1498_s15, 128, %s2568_s5, [#allocation13]   ;;  %1471 = vst [vmem:[#allocation11 + $0x1c] sm:$0xf] %v1469_v58 }
 0x828   :  { %s1906_s23 = scalar_lea.vmem %s1508_s17, 128  ;;  %p1911_p7 = scmp.lt.s32.totalorder %s1508_s17, %s1508_s17 }
 0x829   :  { %p1907_p6 = scmp.ne.s32.totalorder %s1508_s17, %s1906_s23  ;;  %p1912_p8 = scmp.lt.s32.totalorder %s1906_s23, %s1906_s23 }
 0x82b   :  { %p1913_p9 = por %p1912_p8, %p1911_p7 }
 0x82d   :  { %p1914_p10 = pnand %p1913_p9, %p1907_p6 }
 0x82f   :  { %1917 = shalt.err (!%p1914_p10)
}
 0x830   :  { %1510 = dma.vmem_to_hbm [thread:$0]  %s1508_s17, 128, %s2569_s6, [#allocation13]  }
 0x831   :  { %s1926_s26 = scalar_lea.vmem %s1485_s19, 512  ;;  %p1931_p12 = scmp.lt.s32.totalorder %s1485_s19, %s1485_s19 }
 0x832   :  { %p1927_p11 = scmp.ne.s32.totalorder %s1485_s19, %s1926_s26  ;;  %p1932_p13 = scmp.lt.s32.totalorder %s1926_s26, %s1926_s26 }
 0x834   :  { %p1933_p0 = por %p1932_p13, %p1931_p12 }
 0x836   :  { %p1934_p1 = pnand %p1933_p0, %p1927_p11 }
 0x838   :  { %1937 = shalt.err (!%p1934_p1)
}
 0x839   :  { %1490 = dma.vmem_to_hbm [thread:$0]  %s1485_s19, 512, %s2567_s4, [#allocation7], %s1958_s7, %s1958_s7, %s1959_s8  }
 0x83a   :  { %1950 = dma.done.wait [#allocation7], 512  }
 0x83b   :  { %1951 = vsyncadd [#allocation7], 4294966784 }
 0x83c   :  { %1952 = dma.done.wait [#allocation13], 256  }
 0x83d   :  { %1953 = vsyncadd [#allocation13], 4294967040 }
 0x83e   :  { %1520 = vsyncpa [#allocation6], 1 }
 0x83f   :  { %1521 = vsyncpa [#allocation9], 1 }
 0x840   :  { %1522 = vsyncpa [#allocation7], 1 }
 0x841   :  { %1523 = vsyncpa [#allocation13], 1 }

</bundles_post_ra>
